<compile_context>
chip_gen: v7x
topology: tpu7x:2x2x1
jax: 0.10.0
libtpu: 0.0.40
codegen_flags: <defaults>
</compile_context>

<pallas_src>
import jax
import jax.numpy as jnp
from jax import lax
from jax.experimental import pallas as pl
from jax.experimental.pallas import tpu as pltpu


def _round_up(v, m):
    return -(-v // m) * m


def _tpu_vmem_capacity_bytes():
    """Physical VMEM per TensorCore; conservative fallback if the query fails."""
    try:
        info = pltpu.get_tpu_info()
        cap = int(getattr(info, "vmem_capacity_bytes", 0) or 0)
        if cap > 0:
            return cap
    except Exception:
        pass
    return 64 << 20  # v7x per-core size: safe lower bound across generations


def _footprint_bytes(th, wp, wo, c, cout):
    """Conservative per-grid-step VMEM footprint (lane/sublane padded, f32)."""
    c_pad, cout_pad = _round_up(c, 128), _round_up(cout, 128)
    wp_pad, wo_pad = _round_up(wp, 8), _round_up(wo, 8)
    in_row = 4 * wp_pad * c_pad
    act_row = 4 * wo_pad * c_pad
    out_row = 4 * wo_pad * cout_pad
    return (2 * (th + 2) * in_row      # double-buffered input tile + 2 halo rows
            + 2 * th * out_row         # double-buffered output tile
            + (th + 2) * in_row        # concatenated band value
            + 2 * th * act_row         # depthwise accumulator + ReLU/cast copies
            + th * out_row)            # f32 matmul result before the store cast


def _pick_block_h(n, ho, wp, wo, c, cout, budget_bytes):
    """Largest divisor of `ho` fitting the per-step VMEM budget, with preferences."""
    fits = [th for th in range(1, ho + 1)
            if ho % th == 0 and _footprint_bytes(th, wp, wo, c, cout) <= budget_bytes]
    if not fits:
        # TODO(synk): fall back to W tiling (2-column halo) instead of failing.
        raise ValueError(
            "depthwise_separable_conv: even block_h=1 exceeds the per-step VMEM "
            f"budget ({_footprint_bytes(1, wp, wo, c, cout)} > {budget_bytes} bytes); "
            "rows are too wide for H-only tiling")

    def score(th):
        return ((th * wo) % 8 == 0,   # sublane-aligned matmul M dim (no relayout)
                th % 2 == 0,          # enables the merged 2-row halo DMA
                th)                   # then: biggest tile that fits

    best = max(fits, key=score)

    # Keep >= 2 grid steps so v7x megacore has work to split (no-op on v5e/v6e),
    # but never shrink below an MXU-filling M tile to achieve it.
    if n * (ho // best) < 2:
        alts = [th for th in fits if n * (ho // th) >= 2 and th * wo >= 256]
        if alts:
            best = max(alts, key=score)
    return best


def _dsc_compute(lo, halo, wdw_ref, b1_ref, wpw_ref, b2_ref, o_ref):
    """Shared body.  lo: (TH, Wp, C) value, halo: (2, Wp, C) value."""
    th = o_ref.shape[1]
    wo = o_ref.shape[2]
    cout = o_ref.shape[3]
    c = lo.shape[-1]

    # (TH+2)-row halo band as a value: the concat is along the leading (plane)
    # axis, so no VMEM->VMEM stitch / band scratch buffer is needed.
    band = jnp.concatenate([lo, halo], axis=0)

    # --- depthwise 3x3, stride 1 (BN1 scale pre-folded into wdw) ---
    wdw = wdw_ref[...]                                # (3, 3, C), read once
    acc = None
    for dy in range(3):
        rows = band[dy:dy + th]                       # plane-axis slice
        for dx in range(3):
            term = rows[:, dx:dx + wo, :] * wdw[dy, dx]
            acc = term if acc is None else acc + term

    # --- BN1 shift + ReLU ---
    y = jnp.maximum(acc + b1_ref[0], 0.0)

    # --- pointwise 1x1 conv as an MXU matmul (f32 accumulation) ---
    y2 = y.reshape(th * wo, c).astype(wpw_ref.dtype)
    z = jnp.dot(y2, wpw_ref[...], preferred_element_type=jnp.float32)

    # --- BN2 shift + ReLU ---
    z = jnp.maximum(z + b2_ref[0], 0.0)
    o_ref[...] = z.reshape(1, th, wo, cout).astype(o_ref.dtype)


def _dsc_kernel_merged(lo_ref, hi_ref, wdw_ref, b1_ref, wpw_ref, b2_ref, o_ref):
    # lo_ref: (1, TH, Wp, C)  rows [j*TH, j*TH+TH);  hi_ref: (1, 2, Wp, C) halo rows.
    _dsc_compute(lo_ref[0], hi_ref[0], wdw_ref, b1_ref, wpw_ref, b2_ref, o_ref)


def _dsc_kernel_split(lo_ref, hi0_ref, hi1_ref, wdw_ref, b1_ref, wpw_ref, b2_ref, o_ref):
    # Fallback for odd block_h: two 1-row halo blocks.
    halo = jnp.concatenate([hi0_ref[0], hi1_ref[0]], axis=0)
    _dsc_compute(lo_ref[0], halo, wdw_ref, b1_ref, wpw_ref, b2_ref, o_ref)


def depthwise_separable_conv(x_nchw, w_dw, bn1, w_pw, bn2, *, stride=1, padding=1,
                             block_h=None, mm_dtype=jnp.bfloat16):
    """x_nchw: (N, Cin, H, W) f32 -> (N, Cout, Ho, Wo) f32.

    w_dw: (3, 3, Cin)  with w_dw[dy, dx, c] == torch_depthwise_weight[c, 0, dy, dx]
    w_pw: (Cin, Cout)  with w_pw[c, o]     == torch_pointwise_weight[o, c, 0, 0]
    bn1/bn2: (gamma, beta, running_mean, running_var, eps), inference mode.
    """
    assert stride == 1, "only stride=1 supported"  # TODO(synk): stride > 1 depthwise
    gamma1, beta1, mean1, var1, eps1 = bn1
    gamma2, beta2, mean2, var2, eps2 = bn2

    n, cin, h, w = x_nchw.shape
    cout = w_pw.shape[1]
    hp, wp = h + 2 * padding, w + 2 * padding
    ho, wo = hp - 2, wp - 2                        # 3x3 kernel, stride 1

    # NCHW -> NHWC (channels on lanes) + spatial zero-pad (wrapper glue).
    # TODO(synk): fold the pad / layout transposes into the kernel for NHWC callers.
    x = jnp.transpose(x_nchw, (0, 2, 3, 1))
    xp = jnp.pad(x, ((0, 0), (padding, padding), (padding, padding), (0, 0)))

    # Fold inference-mode BN scale into the conv weights; keep only the shifts.
    inv1 = gamma1 / jnp.sqrt(var1 + eps1)
    inv2 = gamma2 / jnp.sqrt(var2 + eps2)
    wdw_f = (w_dw * inv1[None, None, :]).astype(jnp.float32)        # (3,3,Cin)
    b1 = (beta1 - mean1 * inv1).reshape(1, cin).astype(jnp.float32)
    wpw_f = (w_pw * inv2[None, :]).astype(mm_dtype)                 # (Cin,Cout)
    b2 = (beta2 - mean2 * inv2).reshape(1, cout).astype(jnp.float32)

    # Generation-aware VMEM budgets: size tiles against ~cap/2, compile limit 3*cap/4
    # (v5e/v6e 128 MiB -> 64 / 96 MiB;  v7x 64 MiB per core -> 32 / 48 MiB).
    cap = _tpu_vmem_capacity_bytes()
    budget = cap // 2
    vmem_limit = (3 * cap) // 4

    th = _pick_block_h(n, ho, wp, wo, cin, cout, budget) if block_h is None else block_h
    if ho % th != 0:
        raise ValueError(f"block_h={th} must divide output height {ho}")
    n_th = ho // th
    merged_halo = (th % 2 == 0)

    # Input halo: one TH-row blocked tile + (merged) one 2-row halo block, or two
    # 1-row halo blocks when TH is odd.  All plain Blocked specs -> automatic
    # double-buffered HBM<->VMEM pipelining.
    lo_spec = pl.BlockSpec((1, th, wp, cin), lambda i, j: (i, j, 0, 0))
    if merged_halo:
        hi_specs = [pl.BlockSpec((1, 2, wp, cin),
                                 lambda i, j, _s=th // 2: (i, (j + 1) * _s, 0, 0))]
        kernel = _dsc_kernel_merged
        halo_args = (xp,)
    else:
        hi_specs = [pl.BlockSpec((1, 1, wp, cin),
                                 lambda i, j, _t=th: (i, j * _t + _t, 0, 0)),
                    pl.BlockSpec((1, 1, wp, cin),
                                 lambda i, j, _t=th: (i, j * _t + _t + 1, 0, 0))]
        kernel = _dsc_kernel_split
        halo_args = (xp, xp)

    def _const_spec(shape):
        nd = len(shape)
        return pl.BlockSpec(shape, lambda i, j, _nd=nd: (0,) * _nd)

    out_spec = pl.BlockSpec((1, th, wo, cout), lambda i, j: (i, j, 0, 0))

    flops = 2 * n * ho * wo * cin * (9 + cout)
    bytes_accessed = (4 * n * n_th * (th + 2) * wp * cin       # input incl. halo re-reads
                      + 4 * n * ho * wo * cout
                      + 4 * int(wdw_f.size)
                      + int(wpw_f.size) * wpw_f.dtype.itemsize
                      + 4 * (cin + cout))

    out_nhwc = pl.pallas_call(
        kernel,
        out_shape=jax.ShapeDtypeStruct((n, ho, wo, cout), jnp.float32),
        grid=(n, n_th),
        in_specs=[lo_spec, *hi_specs,
                  _const_spec(wdw_f.shape), _const_spec(b1.shape),
                  _const_spec(wpw_f.shape), _const_spec(b2.shape)],
        out_specs=out_spec,
        compiler_params=pltpu.CompilerParams(
            dimension_semantics=("parallel", "parallel"),
            vmem_limit_bytes=int(vmem_limit)),
        cost_estimate=pl.CostEstimate(flops=int(flops), transcendentals=0,
                                      bytes_accessed=int(bytes_accessed)),
    )(xp, *halo_args, wdw_f, b1, wpw_f, b2)

    return jnp.transpose(out_nhwc, (0, 3, 1, 2))  # back to NCHW


def _reference(x_nchw, w_dw, bn1, w_pw, bn2, *, padding=1):
    """Pure-JAX f32 reference (lax convs) for validation."""
    gamma1, beta1, mean1, var1, eps1 = bn1
    gamma2, beta2, mean2, var2, eps2 = bn2
    N, Cin, H, W = x_nchw.shape
    Cout = w_pw.shape[1]
    x = jnp.transpose(x_nchw, (0, 2, 3, 1))
    dn = lax.conv_dimension_numbers(x.shape, (3, 3, 1, Cin), ("NHWC", "HWIO", "NHWC"))
    y = lax.conv_general_dilated(
        x, w_dw.reshape(3, 3, 1, Cin), window_strides=(1, 1),
        padding=[(padding, padding), (padding, padding)],
        dimension_numbers=dn, feature_group_count=Cin)
    y = (y - mean1) / jnp.sqrt(var1 + eps1) * gamma1 + beta1
    y = jnp.maximum(y, 0.0)
    dn2 = lax.conv_dimension_numbers(y.shape, (1, 1, Cin, Cout), ("NHWC", "HWIO", "NHWC"))
    z = lax.conv_general_dilated(
        y, w_pw.reshape(1, 1, Cin, Cout), window_strides=(1, 1),
        padding=[(0, 0), (0, 0)], dimension_numbers=dn2)
    z = (z - mean2) / jnp.sqrt(var2 + eps2) * gamma2 + beta2
    z = jnp.maximum(z, 0.0)
    return jnp.transpose(z, (0, 3, 1, 2))


if __name__ == "__main__":
    key = jax.random.PRNGKey(0)
    k_x, k_dw, k_pw, k_g1, k_b1, k_g2, k_b2 = jax.random.split(key, 7)

    N, Cin, Cout, H, W = 2, 4, 8, 16, 16

    x = jax.random.normal(k_x, (N, Cin, H, W), jnp.float32)

    # Depthwise weights as (3, 3, Cin); pointwise weights as (Cin, Cout).
    w_dw = jax.random.normal(k_dw, (3, 3, Cin), jnp.float32) * 0.2
    w_pw = jax.random.normal(k_pw, (Cin, Cout), jnp.float32) * 0.2

    # BatchNorm parameters (inference mode), deterministic.
    bn1 = (1.0 + 0.1 * jax.random.normal(k_g1, (Cin,), jnp.float32),
           0.1 * jax.random.normal(k_b1, (Cin,), jnp.float32),
           jnp.linspace(-0.2, 0.2, Cin, dtype=jnp.float32),
           jnp.linspace(0.8, 1.2, Cin, dtype=jnp.float32),
           1e-5)
    bn2 = (1.0 + 0.1 * jax.random.normal(k_g2, (Cout,), jnp.float32),
           0.1 * jax.random.normal(k_b2, (Cout,), jnp.float32),
           jnp.linspace(-0.1, 0.1, Cout, dtype=jnp.float32),
           jnp.linspace(0.9, 1.1, Cout, dtype=jnp.float32),
           1e-5)

    ref = _reference(x, w_dw, bn1, w_pw, bn2, padding=1)

    # 1) exact-precision path (f32 matmul), auto block_h (merged 2-row halo).
    out_f32 = depthwise_separable_conv(x, w_dw, bn1, w_pw, bn2, stride=1, padding=1,
                                       mm_dtype=jnp.float32)
    out_f32 = jax.block_until_ready(out_f32)
    assert out_f32.shape == (N, Cout, H, W)
    assert jnp.allclose(out_f32, ref, atol=1e-4, rtol=1e-4), "f32 path mismatch"

    # 2) default bf16-MXU path, block_h=8 -> grid (N, 2), exercises H tiling +
    #    merged halo.  Tolerance relaxed: pointwise matmul operands are bf16.
    out_bf16 = depthwise_separable_conv(x, w_dw, bn1, w_pw, bn2, stride=1, padding=1,
                                        block_h=8)
    out_bf16 = jax.block_until_ready(out_bf16)
    assert out_bf16.shape == (N, Cout, H, W)
    assert jnp.allclose(out_bf16, ref, atol=5e-2, rtol=5e-2), "bf16 path mismatch"

    # 3) odd output height -> exercises the split (two 1-row halo) fallback path.
    x_odd = jax.random.normal(k_x, (1, Cin, 5, 8), jnp.float32)
    ref_odd = _reference(x_odd, w_dw, bn1, w_pw, bn2, padding=1)
    out_odd = depthwise_separable_conv(x_odd, w_dw, bn1, w_pw, bn2, stride=1, padding=1,
                                       mm_dtype=jnp.float32)
    out_odd = jax.block_until_ready(out_odd)
    assert out_odd.shape == (1, Cout, 5, 8)
    assert jnp.allclose(out_odd, ref_odd, atol=1e-4, rtol=1e-4), "odd-H path mismatch"

    print("KERNEL_OK")
</pallas_src>

<mosaic_0001>
module attributes {stable_mosaic.version = 11 : i64} {
  func.func @_dsc_kernel_merged(%arg0: i32, %arg1: i32, %arg2: memref<1x16x18x4xf32, #tpu.memory_space<vmem>>, %arg3: memref<1x2x18x4xf32, #tpu.memory_space<vmem>>, %arg4: memref<3x3x4xf32, #tpu.memory_space<vmem>>, %arg5: memref<1x4xf32, #tpu.memory_space<vmem>>, %arg6: memref<4x8xf32, #tpu.memory_space<vmem>>, %arg7: memref<1x8xf32, #tpu.memory_space<vmem>>, %arg8: memref<1x16x16x8xf32, #tpu.memory_space<vmem>>) attributes {dimension_semantics = [#tpu.dimension_semantics<parallel>, #tpu.dimension_semantics<parallel>], iteration_bounds = array<i64: 2, 1>, scalar_prefetch = 0 : i64, scratch_operands = 0 : i64, tpu.core_type = #tpu.core_type<tc>, window_params = [{transform_indices = @transform_0, window_bounds = array<i64: 1, 16, 18, 4>}, {transform_indices = @transform_1, window_bounds = array<i64: 1, 2, 18, 4>}, {pipeline_mode = #tpu.pipeline_mode<synchronous>, transform_indices = @transform_2, window_bounds = array<i64: 3, 3, 4>}, {pipeline_mode = #tpu.pipeline_mode<synchronous>, transform_indices = @transform_3, window_bounds = array<i64: 1, 4>}, {pipeline_mode = #tpu.pipeline_mode<synchronous>, transform_indices = @transform_4, window_bounds = array<i64: 4, 8>}, {pipeline_mode = #tpu.pipeline_mode<synchronous>, transform_indices = @transform_5, window_bounds = array<i64: 1, 8>}, {transform_indices = @transform_6, window_bounds = array<i64: 1, 16, 16, 8>}]} {
    %c0 = arith.constant 0 : index
    %c0_0 = arith.constant 0 : index
    %c0_1 = arith.constant 0 : index
    %c0_2 = arith.constant 0 : index
    %0 = vector.load %arg2[%c0, %c0_0, %c0_1, %c0_2] : memref<1x16x18x4xf32, #tpu.memory_space<vmem>>, vector<1x16x18x4xf32>
    %1 = vector.shape_cast %0 : vector<1x16x18x4xf32> to vector<16x18x4xf32>
    %c0_3 = arith.constant 0 : index
    %c0_4 = arith.constant 0 : index
    %c0_5 = arith.constant 0 : index
    %c0_6 = arith.constant 0 : index
    %2 = vector.load %arg3[%c0_3, %c0_4, %c0_5, %c0_6] : memref<1x2x18x4xf32, #tpu.memory_space<vmem>>, vector<1x2x18x4xf32>
    %3 = vector.shape_cast %2 : vector<1x2x18x4xf32> to vector<2x18x4xf32>
    %4 = tpu.concatenate %1, %3 in 0 : vector<16x18x4xf32>, vector<2x18x4xf32> -> vector<18x18x4xf32>
    %c0_7 = arith.constant 0 : index
    %c0_8 = arith.constant 0 : index
    %c0_9 = arith.constant 0 : index
    %5 = vector.load %arg4[%c0_7, %c0_8, %c0_9] : memref<3x3x4xf32, #tpu.memory_space<vmem>>, vector<3x3x4xf32>
    %6 = vector.extract_strided_slice %4 {offsets = [0, 0, 0], sizes = [16, 18, 4], strides = [1, 1, 1]} : vector<18x18x4xf32> to vector<16x18x4xf32>
    %7 = vector.extract_strided_slice %6 {offsets = [0, 0, 0], sizes = [16, 16, 4], strides = [1, 1, 1]} : vector<16x18x4xf32> to vector<16x16x4xf32>
    %8 = vector.extract_strided_slice %5 {offsets = [0, 0, 0], sizes = [1, 1, 4], strides = [1, 1, 1]} : vector<3x3x4xf32> to vector<1x1x4xf32>
    %9 = vector.shape_cast %8 : vector<1x1x4xf32> to vector<4xf32>
    %10 = vector.shape_cast %9 : vector<4xf32> to vector<1x1x4xf32>
    %11 = vector.broadcast %10 : vector<1x1x4xf32> to vector<16x16x4xf32>
    %12 = arith.mulf %7, %11 : vector<16x16x4xf32>
    %13 = vector.extract_strided_slice %6 {offsets = [0, 1, 0], sizes = [16, 16, 4], strides = [1, 1, 1]} : vector<16x18x4xf32> to vector<16x16x4xf32>
    %14 = vector.extract_strided_slice %5 {offsets = [0, 1, 0], sizes = [1, 1, 4], strides = [1, 1, 1]} : vector<3x3x4xf32> to vector<1x1x4xf32>
    %15 = vector.shape_cast %14 : vector<1x1x4xf32> to vector<4xf32>
    %16 = vector.shape_cast %15 : vector<4xf32> to vector<1x1x4xf32>
    %17 = vector.broadcast %16 : vector<1x1x4xf32> to vector<16x16x4xf32>
    %18 = arith.mulf %13, %17 : vector<16x16x4xf32>
    %19 = arith.addf %12, %18 : vector<16x16x4xf32>
    %20 = vector.extract_strided_slice %6 {offsets = [0, 2, 0], sizes = [16, 16, 4], strides = [1, 1, 1]} : vector<16x18x4xf32> to vector<16x16x4xf32>
    %21 = vector.extract_strided_slice %5 {offsets = [0, 2, 0], sizes = [1, 1, 4], strides = [1, 1, 1]} : vector<3x3x4xf32> to vector<1x1x4xf32>
    %22 = vector.shape_cast %21 : vector<1x1x4xf32> to vector<4xf32>
    %23 = vector.shape_cast %22 : vector<4xf32> to vector<1x1x4xf32>
    %24 = vector.broadcast %23 : vector<1x1x4xf32> to vector<16x16x4xf32>
    %25 = arith.mulf %20, %24 : vector<16x16x4xf32>
    %26 = arith.addf %19, %25 : vector<16x16x4xf32>
    %27 = vector.extract_strided_slice %4 {offsets = [1, 0, 0], sizes = [16, 18, 4], strides = [1, 1, 1]} : vector<18x18x4xf32> to vector<16x18x4xf32>
    %28 = vector.extract_strided_slice %27 {offsets = [0, 0, 0], sizes = [16, 16, 4], strides = [1, 1, 1]} : vector<16x18x4xf32> to vector<16x16x4xf32>
    %29 = vector.extract_strided_slice %5 {offsets = [1, 0, 0], sizes = [1, 1, 4], strides = [1, 1, 1]} : vector<3x3x4xf32> to vector<1x1x4xf32>
    %30 = vector.shape_cast %29 : vector<1x1x4xf32> to vector<4xf32>
    %31 = vector.shape_cast %30 : vector<4xf32> to vector<1x1x4xf32>
    %32 = vector.broadcast %31 : vector<1x1x4xf32> to vector<16x16x4xf32>
    %33 = arith.mulf %28, %32 : vector<16x16x4xf32>
    %34 = arith.addf %26, %33 : vector<16x16x4xf32>
    %35 = vector.extract_strided_slice %27 {offsets = [0, 1, 0], sizes = [16, 16, 4], strides = [1, 1, 1]} : vector<16x18x4xf32> to vector<16x16x4xf32>
    %36 = vector.extract_strided_slice %5 {offsets = [1, 1, 0], sizes = [1, 1, 4], strides = [1, 1, 1]} : vector<3x3x4xf32> to vector<1x1x4xf32>
    %37 = vector.shape_cast %36 : vector<1x1x4xf32> to vector<4xf32>
    %38 = vector.shape_cast %37 : vector<4xf32> to vector<1x1x4xf32>
    %39 = vector.broadcast %38 : vector<1x1x4xf32> to vector<16x16x4xf32>
    %40 = arith.mulf %35, %39 : vector<16x16x4xf32>
    %41 = arith.addf %34, %40 : vector<16x16x4xf32>
    %42 = vector.extract_strided_slice %27 {offsets = [0, 2, 0], sizes = [16, 16, 4], strides = [1, 1, 1]} : vector<16x18x4xf32> to vector<16x16x4xf32>
    %43 = vector.extract_strided_slice %5 {offsets = [1, 2, 0], sizes = [1, 1, 4], strides = [1, 1, 1]} : vector<3x3x4xf32> to vector<1x1x4xf32>
    %44 = vector.shape_cast %43 : vector<1x1x4xf32> to vector<4xf32>
    %45 = vector.shape_cast %44 : vector<4xf32> to vector<1x1x4xf32>
    %46 = vector.broadcast %45 : vector<1x1x4xf32> to vector<16x16x4xf32>
    %47 = arith.mulf %42, %46 : vector<16x16x4xf32>
    %48 = arith.addf %41, %47 : vector<16x16x4xf32>
    %49 = vector.extract_strided_slice %4 {offsets = [2, 0, 0], sizes = [16, 18, 4], strides = [1, 1, 1]} : vector<18x18x4xf32> to vector<16x18x4xf32>
    %50 = vector.extract_strided_slice %49 {offsets = [0, 0, 0], sizes = [16, 16, 4], strides = [1, 1, 1]} : vector<16x18x4xf32> to vector<16x16x4xf32>
    %51 = vector.extract_strided_slice %5 {offsets = [2, 0, 0], sizes = [1, 1, 4], strides = [1, 1, 1]} : vector<3x3x4xf32> to vector<1x1x4xf32>
    %52 = vector.shape_cast %51 : vector<1x1x4xf32> to vector<4xf32>
    %53 = vector.shape_cast %52 : vector<4xf32> to vector<1x1x4xf32>
    %54 = vector.broadcast %53 : vector<1x1x4xf32> to vector<16x16x4xf32>
    %55 = arith.mulf %50, %54 : vector<16x16x4xf32>
    %56 = arith.addf %48, %55 : vector<16x16x4xf32>
    %57 = vector.extract_strided_slice %49 {offsets = [0, 1, 0], sizes = [16, 16, 4], strides = [1, 1, 1]} : vector<16x18x4xf32> to vector<16x16x4xf32>
    %58 = vector.extract_strided_slice %5 {offsets = [2, 1, 0], sizes = [1, 1, 4], strides = [1, 1, 1]} : vector<3x3x4xf32> to vector<1x1x4xf32>
    %59 = vector.shape_cast %58 : vector<1x1x4xf32> to vector<4xf32>
    %60 = vector.shape_cast %59 : vector<4xf32> to vector<1x1x4xf32>
    %61 = vector.broadcast %60 : vector<1x1x4xf32> to vector<16x16x4xf32>
    %62 = arith.mulf %57, %61 : vector<16x16x4xf32>
    %63 = arith.addf %56, %62 : vector<16x16x4xf32>
    %64 = vector.extract_strided_slice %49 {offsets = [0, 2, 0], sizes = [16, 16, 4], strides = [1, 1, 1]} : vector<16x18x4xf32> to vector<16x16x4xf32>
    %65 = vector.extract_strided_slice %5 {offsets = [2, 2, 0], sizes = [1, 1, 4], strides = [1, 1, 1]} : vector<3x3x4xf32> to vector<1x1x4xf32>
    %66 = vector.shape_cast %65 : vector<1x1x4xf32> to vector<4xf32>
    %67 = vector.shape_cast %66 : vector<4xf32> to vector<1x1x4xf32>
    %68 = vector.broadcast %67 : vector<1x1x4xf32> to vector<16x16x4xf32>
    %69 = arith.mulf %64, %68 : vector<16x16x4xf32>
    %70 = arith.addf %63, %69 : vector<16x16x4xf32>
    %c0_10 = arith.constant 0 : index
    %c0_11 = arith.constant 0 : index
    %71 = vector.load %arg5[%c0_10, %c0_11] : memref<1x4xf32, #tpu.memory_space<vmem>>, vector<1x4xf32>
    %72 = vector.shape_cast %71 : vector<1x4xf32> to vector<4xf32>
    %73 = vector.shape_cast %72 : vector<4xf32> to vector<1x1x4xf32>
    %74 = vector.broadcast %73 : vector<1x1x4xf32> to vector<16x16x4xf32>
    %75 = arith.addf %70, %74 : vector<16x16x4xf32>
    %cst = arith.constant 0.000000e+00 : f32
    %76 = vector.broadcast %cst : f32 to vector<16x16x4xf32>
    %77 = arith.maximumf %75, %76 : vector<16x16x4xf32>
    %78 = vector.shape_cast %77 : vector<16x16x4xf32> to vector<256x4xf32>
    %c0_12 = arith.constant 0 : index
    %c0_13 = arith.constant 0 : index
    %79 = vector.load %arg6[%c0_12, %c0_13] : memref<4x8xf32, #tpu.memory_space<vmem>>, vector<4x8xf32>
    %cst_14 = arith.constant dense<0.000000e+00> : vector<256x8xf32>
    %80 = tpu.matmul %78, %79, %cst_14 {dimension_numbers = #tpu.dot_dimension_numbers<[1], [0], [0], [1], [0, 0, 1, 1], [], []>} : vector<256x4xf32>, vector<4x8xf32>, vector<256x8xf32> -> vector<256x8xf32>
    %c0_15 = arith.constant 0 : index
    %c0_16 = arith.constant 0 : index
    %81 = vector.load %arg7[%c0_15, %c0_16] : memref<1x8xf32, #tpu.memory_space<vmem>>, vector<1x8xf32>
    %82 = vector.shape_cast %81 : vector<1x8xf32> to vector<8xf32>
    %83 = vector.shape_cast %82 : vector<8xf32> to vector<1x8xf32>
    %84 = vector.broadcast %83 : vector<1x8xf32> to vector<256x8xf32>
    %85 = arith.addf %80, %84 : vector<256x8xf32>
    %cst_17 = arith.constant 0.000000e+00 : f32
    %86 = vector.broadcast %cst_17 : f32 to vector<256x8xf32>
    %87 = arith.maximumf %85, %86 : vector<256x8xf32>
    %88 = vector.shape_cast %87 : vector<256x8xf32> to vector<1x16x16x8xf32>
    %c0_18 = arith.constant 0 : index
    %c0_19 = arith.constant 0 : index
    %c0_20 = arith.constant 0 : index
    %c0_21 = arith.constant 0 : index
    %89 = vector.load %arg8[%c0_18, %c0_19, %c0_20, %c0_21] : memref<1x16x16x8xf32, #tpu.memory_space<vmem>>, vector<1x16x16x8xf32>
    tpu.vector_store %arg8[%c0_18, %c0_19, %c0_20, %c0_21], %88 {strides = array<i32>} : memref<1x16x16x8xf32, #tpu.memory_space<vmem>>, vector<1x16x16x8xf32>,
    return
  }
  func.func @transform_0(%arg0: i32, %arg1: i32) -> (i32, i32, i32, i32) {
    %c0_i32 = arith.constant 0 : i32
    %c0_i32_0 = arith.constant 0 : i32
    %c0_i32_1 = arith.constant 0 : i32
    return %arg0, %arg1, %c0_i32, %c0_i32_0 : i32, i32, i32, i32
  }
  func.func @transform_1(%arg0: i32, %arg1: i32) -> (i32, i32, i32, i32) {
    %c1_i32 = arith.constant 1 : i32
    %0 = arith.addi %arg1, %c1_i32 : i32
    %c8_i32 = arith.constant 8 : i32
    %1 = arith.muli %0, %c8_i32 : i32
    %c0_i32 = arith.constant 0 : i32
    %c0_i32_0 = arith.constant 0 : i32
    %c0_i32_1 = arith.constant 0 : i32
    return %arg0, %1, %c0_i32, %c0_i32_0 : i32, i32, i32, i32
  }
  func.func @transform_2(%arg0: i32, %arg1: i32) -> (i32, i32, i32) {
    %c0_i32 = arith.constant 0 : i32
    %c0_i32_0 = arith.constant 0 : i32
    %c0_i32_1 = arith.constant 0 : i32
    %c0_i32_2 = arith.constant 0 : i32
    return %c0_i32, %c0_i32_0, %c0_i32_1 : i32, i32, i32
  }
  func.func @transform_3(%arg0: i32, %arg1: i32) -> (i32, i32) {
    %c0_i32 = arith.constant 0 : i32
    %c0_i32_0 = arith.constant 0 : i32
    %c0_i32_1 = arith.constant 0 : i32
    return %c0_i32, %c0_i32_0 : i32, i32
  }
  func.func @transform_4(%arg0: i32, %arg1: i32) -> (i32, i32) {
    %c0_i32 = arith.constant 0 : i32
    %c0_i32_0 = arith.constant 0 : i32
    %c0_i32_1 = arith.constant 0 : i32
    return %c0_i32, %c0_i32_0 : i32, i32
  }
  func.func @transform_5(%arg0: i32, %arg1: i32) -> (i32, i32) {
    %c0_i32 = arith.constant 0 : i32
    %c0_i32_0 = arith.constant 0 : i32
    %c0_i32_1 = arith.constant 0 : i32
    return %c0_i32, %c0_i32_0 : i32, i32
  }
  func.func @transform_6(%arg0: i32, %arg1: i32) -> (i32, i32, i32, i32) {
    %c0_i32 = arith.constant 0 : i32
    %c0_i32_0 = arith.constant 0 : i32
    %c0_i32_1 = arith.constant 0 : i32
    return %arg0, %arg1, %c0_i32, %c0_i32_0 : i32, i32, i32, i32
  }
}

</mosaic_0001>

<bundles_post_ra>
// kernel: tpu_custom_call.1
= control target key start
LH: loop header
LB: loop body
LE: loop exit
PB: predicated region body
PF: predicated region fallthrough
CT: control target
= control target key end

     0   :  { %s2884_s21 = smov 0   ;;  %s2886_s22 = smov 0   ;;  %s4932_s0 = inlined_call_operand.vmem [shape: f32[2,18,18,4], index: 0, kind: input, shape index: {}]   ;;  %s4933_s1 = inlined_call_operand.vmem [shape: f32[2,18,18,4], index: 1, kind: input, shape index: {}]   ;;  %s4934_s2 = inlined_call_operand.vmem [shape: f32[3,3,4], index: 2, kind: input, shape index: {}]   ;;  %s4935_s3 = inlined_call_operand.vmem [shape: f32[1,4], index: 3, kind: input, shape index: {}]   ;;  %s4936_s4 = inlined_call_operand.vmem [shape: f32[4,8], index: 4, kind: input, shape index: {}]   ;;  %s4937_s5 = inlined_call_operand.vmem [shape: f32[1,8], index: 5, kind: input, shape index: {}]   ;;  %s4938_s6 = inlined_call_operand.vmem [shape: f32[2,16,16,8], index: 6, kind: output, shape index: {}]  }
   0x1   :  { %s2888_s23 = smov 0  }
   0x2 LB: > { %s28_s24 = sadd.s32 1, %s2843_s22  ;;  %p2660_p0 = scmp.ge.s32.totalorder %s2847_s23, 1  ;;  %s2847_s23 = sphi %s2888_s23, %s16_s23   ;;  %s2843_s22 = sphi %s2886_s22, %s4976_s22   ;;  %s2839_s21 = sphi %s2884_s21, %s4975_s21  }
   0x3   : > { %p30_p1 = scmp.ge.s32.totalorder %s28_s24, 2  ;;  %p270_p2 = scmp.lt.s32.totalorder %s2847_s23, 3 }
   0x5   : > { %s4978_s24 = smov (%p30_p1, %s28_s24), 0  ;;  %p271_p3 = pnand %p2660_p0, %p270_p2 }
   0x6   : > { %v2140_v0 = vld [vmem:[%s4936_s4] sm:$0xf] (!%p271_p3)  ;;  %vm2245_vm0 = vcmask (!%p271_p3), 1043456   ;;  %p333_p4 = scmp.lt.s32.totalorder (!%p271_p3), %s2839_s21, 1  ;;  %v431_v1 = vlaneseq (!%p271_p3)  ;;  %v429_v4 = vld [vmem:[%s4934_s2 + $0x4] sm:$0x7] (!%p271_p3) }
   0x7   : > { %274 = sbr.rel (%p271_p3) target bundleno = 550 (0x226), region = 44  ;;  %2738 = vmatprep.subr.msk.mxu0 (!%p271_p3), %vm2245_vm0, %v2140_v0  ;;  %2788 = vmatprep.subr.msk.mxu1 (!%p271_p3), %vm2245_vm0, %v2140_v0  ;;  %v428_v3 = vld [vmem:[%s4934_s2] sm:$0x7] (!%p271_p3)  ;;  %v430_v5 = vld [vmem:[%s4934_s2 + $0x8] sm:$0x7] (!%p271_p3)  ;;  %vm567_vm1 = vcmask (!%p271_p3), 1046528  }
   0x8   : > { %2739 = vmatpush3.msk.msra.mxu0 (!%p271_p3), %vm2245_vm0, %v2140_v0  ;;  %2789 = vmatpush3.msk.msra.mxu1 (!%p271_p3), %vm2245_vm0, %v2140_v0  ;;  %v432_v2 = vshrl.u32 (!%p271_p3), %v431_v1, 7  ;;  %vm812_vm2 = vcmask (!%p271_p3), 1045504   ;;  %vm2148_vm3 = vcmask (!%p271_p3), 31744   ;;  %vm2506_vm4 = vcmask (!%p271_p3), 64512  }
   0xa   : > { %v433_v6 = vsub.s32 (!%p271_p3), 0, %v432_v2  ;;  %v469_v7 = vsub.s32 (!%p271_p3), 1, %v432_v2  ;;  %v714_v8 = vsub.s32 (!%p271_p3), 2, %v432_v2 }
   0xc   : > { %v2924_v9 = vrot.slane (!%p271_p3), %v428_v3, %v433_v6  ;;  %v2926_v10 = vrot.slane (!%p271_p3), %v428_v3, %v469_v7  ;;  %v2928_v11 = vrot.slane (!%p271_p3), %v428_v3, %v714_v8  ;;  %v2934_v14 = vrot.slane (!%p271_p3), %v429_v4, %v433_v6 }
   0xd   : > { %v2936_v15 = vrot.slane (!%p271_p3), %v429_v4, %v469_v7  ;;  %v2938_v16 = vrot.slane (!%p271_p3), %v429_v4, %v714_v8  ;;  %v2940_v17 = vrot.slane (!%p271_p3), %v430_v5, %v433_v6  ;;  %v2954_v23 = vrot.slane (!%p271_p3), %v430_v5, %v469_v7 }
   0xe   : > { %s4980_s21 = smov (!%p333_p4, %s2839_s21), 1  ;;  %v3006_v51 = vrot.slane %v430_v5, %v714_v8 }
   0xf   : > { %s2790_s7 = smul.u32 432, %s4980_s21  ;;  %s2704_s29 = sshll.u32 %s4980_s21, 8 }
  0x11   : > { %s2922_s12 = scalar_lea.vmem %s4932_s0, %s2790_s7  ;;  %s2703_s17 = sadd.s32 384, %s2790_s7 }
  0x12   : > { %v374_v12 = vld [vmem:[%s2922_s12] sm:$0xff]  ;;  %v2932_v13 = vld [vmem:[%s2922_s12 + $0x8] sm:$0xff]  ;;  %v2943_v18 = vld [vmem:[%s2922_s12 + $0x18] sm:$0xff]  ;;  %s4440_s20 = scalar_lea.vmem %s4933_s1, %s2703_s17  ;;  %s4810_s7 = scalar_lea.vmem %s4938_s6, %s2704_s29 }
  0x13   : > { %v2946_v19 = vld [vmem:[%s2922_s12 + $0x20] sm:$0xff]  ;;  %v471_v20 = vmul.f32 %v2926_v10, %v374_v12  ;;  %v2951_v21 = vmul.f32 %v2926_v10, %v2932_v13  ;;  %v716_v22 = vmul.f32 %v2928_v11, %v374_v12  ;;  %v435_v24 = vmul.f32 %v2924_v9, %v374_v12  ;;  %v2971_v32 = vld [vmem:[%s2922_s12 + $0x30] sm:$0xff]  ;;  %v2988_v42 = vld [vmem:[%s2922_s12 + $0xc8] sm:$0xff] }
  0x14   : > { %v2959_v25 = vmul.f32 %v2928_v11, %v2932_v13  ;;  %v1029_v26 = vmul.f32 %v2936_v15, %v2943_v18  ;;  %v2965_v27 = vmul.f32 %v2936_v15, %v2946_v19  ;;  %v1273_v31 = vmul.f32 %v2938_v16, %v2943_v18  ;;  %v398_v41 = vld [vmem:[%s2922_s12 + $0xc0] sm:$0xff]  ;;  %v2991_v43 = vld [vmem:[%s2922_s12 + $0x38] sm:$0xff] }
  0x15   : > { %v568_v28 = vrot.slane %v471_v20, 1  ;;  %v569_v29 = vrot.slane %v2951_v21, 1  ;;  %v813_v30 = vrot.slane %v716_v22, 2  ;;  %v2977_v36 = vmul.f32 %v2938_v16, %v2946_v19  ;;  %v3035_v6 = vld [vmem:[%s2922_s12 + $0xd8] sm:$0xff]  ;;  %v3038_v7 = vld [vmem:[%s2922_s12 + $0xe0] sm:$0xff] }
  0x16   : > { %v814_v33 = vrot.slane %v2959_v25, 2  ;;  %v1125_v34 = vrot.slane %v1029_v26, 1  ;;  %v1126_v35 = vrot.slane %v2965_v27, 1  ;;  %v961_v38 = vmul.f32 %v2934_v14, %v2943_v18 }
  0x17   : > { %v570_v37 = vsel %vm567_vm1, %v568_v28, %v569_v29  ;;  %v1369_v39 = vrot.slane %v1273_v31, 2  ;;  %v1585_v40 = vmul.f32 %v2954_v23, %v2971_v32  ;;  %v1517_v47 = vmul.f32 %v2940_v17, %v2971_v32 }
  0x18   : > { %v680_v44 = vadd.f32 %v570_v37, %v435_v24  ;;  %v815_v45 = vsel %vm812_vm2, %v813_v30, %v814_v33  ;;  %v1127_v46 = vsel %vm567_vm1, %v1125_v34, %v1126_v35  ;;  %v1370_v48 = vrot.slane %v2977_v36, 2 }
  0x19   : > { %v3004_v49 = vmul.f32 %v2954_v23, %v2991_v43  ;;  %v1681_v50 = vrot.slane %v1585_v40, 1  ;;  %v451_v53 = vmul.f32 %v2924_v9, %v398_v41  ;;  %v495_v54 = vmul.f32 %v2926_v10, %v398_v41 }
  0x1a   : > { %v925_v52 = vadd.f32 %v815_v45, %v680_v44  ;;  %v3012_v55 = vmul.f32 %v2926_v10, %v2988_v42  ;;  %v1829_v57 = vmul.f32 %v3006_v51, %v2971_v32  ;;  %v3019_v58 = vmul.f32 %v3006_v51, %v2991_v43  ;;  %v3069_v45 = vld [vmem:[%s2922_s12 + $0xf8] sm:$0xff] }
  0x1b   : > { %v1682_v56 = vrot.slane %v3004_v49, 1  ;;  %v740_v59 = vmul.f32 %v2928_v11, %v398_v41  ;;  %v608_v61 = vrot.slane %v495_v54, 1  ;;  %v3025_v63 = vmul.f32 %v2928_v11, %v2988_v42 }
  0x1c   : > { %v993_v60 = vadd.f32 %v961_v38, %v925_v52  ;;  %v609_v62 = vrot.slane %v3012_v55, 1  ;;  %v1371_v0 = vsel %vm812_vm2, %v1369_v39, %v1370_v48  ;;  %v1925_v1 = vrot.slane %v1829_v57, 2  ;;  %v3065_v38 = vld [vmem:[%s2922_s12 + $0xf0] sm:$0xff] }
  0x1d   : > { %v1926_v2 = vrot.slane %v3019_v58, 2  ;;  %v853_v3 = vrot.slane %v740_v59, 2  ;;  %v1683_v5 = vsel %vm567_vm1, %v1681_v50, %v1682_v56  ;;  %v854_v12 = vrot.slane %v3025_v63, 2  ;;  %v376_v59 = vld [vmem:[%s2922_s12 + $0x10] sm:$0x3] }
  0x1e   : > { %v1237_v4 = vadd.f32 %v1127_v46, %v993_v60  ;;  %v610_v8 = vsel %vm567_vm1, %v608_v61, %v609_v62  ;;  %v977_v22 = vmul.f32 %v2934_v14, %v3035_v6  ;;  %v1053_v24 = vmul.f32 %v2936_v15, %v3035_v6 }
  0x1f   : > { %v696_v20 = vadd.f32 %v610_v8, %v451_v53  ;;  %v3050_v26 = vmul.f32 %v2936_v15, %v3038_v7  ;;  %v855_v30 = vsel %vm812_vm2, %v853_v3, %v854_v12  ;;  %v1297_v31 = vmul.f32 %v2938_v16, %v3035_v6  ;;  %v3094_v3 = vld [vmem:[%s4935_s3] ss:$0 sm:$0xff] }
  0x20   : > { %v1481_v28 = vadd.f32 %v1371_v0, %v1237_v4  ;;  %v3059_v34 = vmul.f32 %v2938_v16, %v3038_v7  ;;  %v1927_v37 = vsel %vm812_vm2, %v1925_v1, %v1926_v2  ;;  %v1165_v40 = vrot.slane %v1053_v24, 1 }
  0x21   : > { %v941_v39 = vadd.f32 %v855_v30, %v696_v20  ;;  %v1166_v41 = vrot.slane %v3050_v26, 1  ;;  %v1409_v46 = vrot.slane %v1297_v31, 2  ;;  %v1609_v52 = vmul.f32 %v2954_v23, %v3065_v38 }
  0x22   : > { %v1549_v44 = vadd.f32 %v1517_v47, %v1481_v28  ;;  %v1410_v50 = vrot.slane %v3059_v34, 2  ;;  %v3079_v57 = vmul.f32 %v2954_v23, %v3069_v45  ;;  %v1853_v47 = vmul.f32 %v3006_v51, %v3065_v38  ;;  %v3101_v28 = vld [vmem:[%s2922_s12 + $0x28] sm:$0x3] }
  0x23   : > { %v1009_v53 = vadd.f32 %v977_v22, %v941_v39  ;;  %v1167_v54 = vsel %vm567_vm1, %v1165_v40, %v1166_v41  ;;  %v1721_v0 = vrot.slane %v1609_v52, 1  ;;  %v3089_v1 = vmul.f32 %v3006_v51, %v3069_v45 }
  0x24   : > { %v1793_v60 = vadd.f32 %v1683_v5, %v1549_v44  ;;  %v1411_v61 = vsel %vm812_vm2, %v1409_v46, %v1410_v50  ;;  %v1533_v8 = vmul.f32 %v2940_v17, %v3065_v38  ;;  %v1722_v5 = vrot.slane %v3079_v57, 1 }
  0x25   : > { %v1253_v4 = vadd.f32 %v1167_v54, %v1009_v53  ;;  %v1965_v20 = vrot.slane %v1853_v47, 2  ;;  %v1966_v24 = vrot.slane %v3089_v1, 2  ;;  %v473_v30 = vmul.f32 %v2926_v10, %v376_v59 }
  0x26   : > { %v2037_v22 = vadd.f32 %v1927_v37, %v1793_v60  ;;  %v718_v31 = vmul.f32 %v2928_v11, %v376_v59  ;;  %v1723_v40 = vsel %vm567_vm1, %v1721_v0, %v1722_v5  ;;  %v436_v44 = vmul.f32 %v2924_v9, %v2932_v13  ;;  %v3119_v60 = vld [vmem:[%s2922_s12 + $0x40] sm:$0x3]  ;;  %v400_v0 = vld [vmem:[%s2922_s12 + $0xd0] sm:$0x3] }
  0x27   : > { %v1497_v39 = vadd.f32 %v1411_v61, %v1253_v4  ;;  %v1031_v37 = vmul.f32 %v2936_v15, %v3101_v28  ;;  %v571_v52 = vrot.slane %v473_v30, 1  ;;  %v962_v54 = vmul.f32 %v2934_v14, %v2946_v19 }
  0x28   : > { %v2076_v46 = vadd.f32 %v3094_v3, %v2037_v22  ;;  %v816_v53 = vrot.slane %v718_v31, 2  ;;  %v1967_v59 = vsel %vm812_vm2, %v1965_v20, %v1966_v24  ;;  %v1275_v13 = vmul.f32 %v2938_v16, %v3101_v28 }
  0x29   : > { %v1565_v47 = vadd.f32 %v1533_v8, %v1497_v39  ;;  %v1128_v61 = vrot.slane %v1031_v37, 1  ;;  %v572_v22 = vsel %vm567_vm1, %v569_v29, %v571_v52  ;;  %v1587_v30 = vmul.f32 %v2954_v23, %v3119_v60 }
  0x2a   : > { %v2108_v4 = vmax.f32 %v2076_v46, 0.0  ;;  %v817_v8 = vsel %vm812_vm2, %v814_v33, %v816_v53  ;;  %v681_v31 = vadd.f32 %v572_v22, %v436_v44  ;;  %v1372_v39 = vrot.slane %v1275_v13, 2  ;;  %v3167_v22 = vld [vmem:[%s2922_s12 + $0x100] sm:$0x3] }
  0x2b   : > { %v1809_v20 = vadd.f32 %v1723_v40, %v1565_v47  ;;  %v1518_v37 = vmul.f32 %v2940_v17, %v2991_v43  ;;  %v1129_v21 = vsel %vm567_vm1, %v1126_v35, %v1128_v61  ;;  %v1684_v29 = vrot.slane %v1587_v30, 1  ;;  %v3151_v47 = vld [vmem:[%s2922_s12 + $0xe8] sm:$0x3] }
  0x2c   : > { %2740 = vmatprep.mubr.msk.f32.mxu0 %vm2148_vm3, %v2108_v4  ;;  %v1831_v25 = vmul.f32 %v3006_v51, %v3119_v60  ;;  %v497_v33 = vmul.f32 %v2926_v10, %v400_v0  ;;  %v926_v40 = vadd.f32 %v817_v8, %v681_v31  ;;  %v452_v44 = vmul.f32 %v2924_v9, %v2988_v42 }
  0x2d   : > { %v2053_v46 = vadd.f32 %v1967_v59, %v1809_v20  ;;  %v742_v52 = vmul.f32 %v2928_v11, %v400_v0  ;;  %v1373_v27 = vsel %vm812_vm2, %v1370_v48, %v1372_v39  ;;  %v1685_v35 = vsel %vm567_vm1, %v1682_v56, %v1684_v29 }
  0x2e   : > { %v1928_v53 = vrot.slane %v1831_v25, 2  ;;  %v611_v61 = vrot.slane %v497_v33, 1  ;;  %v994_v13 = vadd.f32 %v962_v54, %v926_v40  ;;  %v1055_v42 = vmul.f32 %v2936_v15, %v3151_v47 }
  0x2f   : > { %v2092_v59 = vadd.f32 %v3094_v3, %v2053_v46  ;;  %v856_v4 = vrot.slane %v742_v52, 2  ;;  %v978_v49 = vmul.f32 %v2934_v14, %v3038_v7  ;;  %v1299_v56 = vmul.f32 %v2938_v16, %v3151_v47 }
  0x30   : > { %v1929_v36 = vsel %vm812_vm2, %v1926_v2, %v1928_v53  ;;  %v612_v48 = vsel %vm567_vm1, %v609_v62, %v611_v61  ;;  %v1238_v54 = vadd.f32 %v1129_v21, %v994_v13  ;;  %v1168_v2 = vrot.slane %v1055_v42, 1 }
  0x31   : > { %v2124_v0 = vmax.f32 %v2092_v59, 0.0  ;;  %v697_v8 = vadd.f32 %v612_v48, %v452_v44  ;;  %v857_v58 = vsel %vm812_vm2, %v854_v12, %v856_v4  ;;  %v1412_v30 = vrot.slane %v1299_v56, 2 }
  0x32   : > { %v1611_v55 = vmul.f32 %v2954_v23, %v3167_v22  ;;  %v1855_v62 = vmul.f32 %v3006_v51, %v3167_v22  ;;  %v1482_v20 = vadd.f32 %v1373_v27, %v1238_v54  ;;  %v1534_v39 = vmul.f32 %v2940_v17, %v3069_v45 }
  0x33   : > { %2764 = vmatprep.mubr.msk.f32.mxu1 %vm2148_vm3, %v2124_v0  ;;  %v942_v31 = vadd.f32 %v857_v58, %v697_v8  ;;  %v474_v63 = vmul.f32 %v2926_v10, %v2943_v18  ;;  %v1169_v12 = vsel %vm567_vm1, %v1166_v41, %v1168_v2  ;;  %v1413_v21 = vsel %vm812_vm2, %v1410_v50, %v1412_v30  ;;  %v3233_v30 = vld [vmem:[%s2922_s12 + $0x50] sm:$0xff] }
  0x34   : > { %v1724_v29 = vrot.slane %v1611_v55, 1  ;;  %v437_v25 = vmul.f32 %v2924_v9, %v2943_v18  ;;  %v1550_v33 = vadd.f32 %v1518_v37, %v1482_v20  ;;  %v3191_v40 = vmul.f32 %v2926_v10, %v2946_v19 }
  0x35   : > { %v1010_v46 = vadd.f32 %v978_v49, %v942_v31  ;;  %v573_v44 = vrot.slane %v474_v63, 1  ;;  %v1968_v41 = vrot.slane %v1855_v62, 2  ;;  %v719_v34 = vmul.f32 %v2928_v11, %v2943_v18 }
  0x36   : > { %v1725_v26 = vsel %vm567_vm1, %v1722_v5, %v1724_v29  ;;  %v3200_v50 = vmul.f32 %v2928_v11, %v2946_v19  ;;  %v1794_v52 = vadd.f32 %v1685_v35, %v1550_v33  ;;  %v574_v27 = vrot.slane %v3191_v40, 1 }
  0x37   : > { %v1254_v37 = vadd.f32 %v1169_v12, %v1010_v46  ;;  %v963_v53 = vmul.f32 %v2934_v14, %v2971_v32  ;;  %v818_v61 = vrot.slane %v719_v34, 2  ;;  %v1032_v5 = vmul.f32 %v2936_v15, %v2971_v32 }
  0x38   : > { %v819_v57 = vrot.slane %v3200_v50, 2  ;;  %v3210_v18 = vmul.f32 %v2936_v15, %v2991_v43  ;;  %v2038_v59 = vadd.f32 %v1929_v36, %v1794_v52  ;;  %v575_v13 = vsel %vm567_vm1, %v573_v44, %v574_v27  ;;  %v3223_v36 = vld [vmem:[%s2922_s12 + $0x48] sm:$0xff] }
  0x39   : > { %v1498_v35 = vadd.f32 %v1413_v21, %v1254_v37  ;;  %v1276_v4 = vmul.f32 %v2938_v16, %v2971_v32  ;;  %v682_v42 = vadd.f32 %v575_v13, %v437_v25  ;;  %v1130_v49 = vrot.slane %v1032_v5, 1 }
  0x3a   : > { %v820_v48 = vsel %vm812_vm2, %v818_v61, %v819_v57  ;;  %v1131_v56 = vrot.slane %v3210_v18, 1  ;;  %v2077_v0 = vadd.f32 %v3094_v3, %v2038_v59  ;;  %v3227_v8 = vmul.f32 %v2938_v16, %v2991_v43 }
  0x3b   : > { %v1566_v54 = vadd.f32 %v1534_v39, %v1498_v35  ;;  %v1374_v58 = vrot.slane %v1276_v4, 2  ;;  %v1969_v2 = vsel %vm812_vm2, %v1966_v24, %v1968_v41  ;;  %v927_v55 = vadd.f32 %v820_v48, %v682_v42 }
  0x3c   : > { %v1132_v62 = vsel %vm567_vm1, %v1130_v49, %v1131_v56  ;;  %v1588_v20 = vmul.f32 %v2954_v23, %v3223_v36  ;;  %v2109_v31 = vmax.f32 %v2077_v0, 0.0  ;;  %v1375_v63 = vrot.slane %v3227_v8, 2  ;;  %v3387_v8 = vld [vmem:[%s2922_s12 + $0x118] sm:$0x3] }
  0x3d   : > { %v1810_v39 = vadd.f32 %v1725_v26, %v1566_v54  ;;  %v3243_v12 = vmul.f32 %v2954_v23, %v3233_v30  ;;  %v995_v1 = vadd.f32 %v963_v53, %v927_v55  ;;  %v1832_v21 = vmul.f32 %v3006_v51, %v3223_v36 }
  0x3e   : > { %v1686_v24 = vrot.slane %v1588_v20, 1  ;;  %v3249_v29 = vmul.f32 %v3006_v51, %v3233_v30  ;;  %2741 = vmatmul.mubr.msk.f32.vlgmr.msra.gmra.mrb[0].mxu0 %vm2148_vm3, %v2109_v31  ;;  %v1376_v33 = vsel %vm812_vm2, %v1374_v58, %v1375_v63  ;;  %v1519_v46 = vmul.f32 %v2940_v17, %v3223_v36 }
  0x3f   : > { %v2054_v25 = vadd.f32 %v1969_v2, %v1810_v39  ;;  %v1687_v44 = vrot.slane %v3243_v12, 1  ;;  %v1239_v26 = vadd.f32 %v1132_v62, %v995_v1  ;;  %v1930_v41 = vrot.slane %v1832_v21, 2  ;;  %v3301_v1 = vld [vmem:[%s2922_s12 + $0x108] sm:$0xff] }
  0x40   : > { %v1931_v34 = vrot.slane %v3249_v29, 2  ;;  %v498_v52 = vmul.f32 %v2926_v10, %v3035_v6  ;;  %v453_v53 = vmul.f32 %v2924_v9, %v3035_v6  ;;  %v3266_v61 = vmul.f32 %v2926_v10, %v3038_v7 }
  0x41   : > { %v2093_v37 = vadd.f32 %v3094_v3, %v2054_v25  ;;  %v743_v5 = vmul.f32 %v2928_v11, %v3035_v6  ;;  %v1483_v59 = vadd.f32 %v1376_v33, %v1239_v26  ;;  %v1688_v35 = vsel %vm567_vm1, %v1686_v24, %v1687_v44  ;;  %v3307_v33 = vld [vmem:[%s2922_s12 + $0x110] sm:$0xff] }
  0x42   : > { %v613_v13 = vrot.slane %v498_v52, 1  ;;  %v3275_v4 = vmul.f32 %v2928_v11, %v3038_v7  ;;  %v1932_v48 = vsel %vm812_vm2, %v1930_v41, %v1931_v34  ;;  %v614_v49 = vrot.slane %v3266_v61, 1 }
  0x43   : > { %v2125_v42 = vmax.f32 %v2093_v37, 0.0  ;;  %v858_v6 = vrot.slane %v743_v5, 2  ;;  %v1551_v0 = vadd.f32 %v1519_v46, %v1483_v59  ;;  %v1056_v58 = vmul.f32 %v2936_v15, %v3065_v38 }
  0x44   : > { %v859_v54 = vrot.slane %v3275_v4, 2  ;;  %v3286_v2 = vmul.f32 %v2936_v15, %v3069_v45  ;;  %v615_v55 = vsel %vm567_vm1, %v613_v13, %v614_v49  ;;  %v979_v62 = vmul.f32 %v2934_v14, %v3065_v38 }
  0x45   : > { %2765 = vmatmul.mubr.msk.f32.vlgmr.msra.gmra.mrb[0].mxu1 %vm2148_vm3, %v2125_v42  ;;  %v1300_v20 = vmul.f32 %v2938_v16, %v3065_v38  ;;  %v3298_v31 = vmul.f32 %v2938_v16, %v3069_v45  ;;  %v1795_v39 = vadd.f32 %v1688_v35, %v1551_v0  ;;  %v698_v24 = vadd.f32 %v615_v55, %v453_v53 }
  0x46   : > { %v860_v21 = vsel %vm812_vm2, %v858_v6, %v859_v54  ;;  %v1170_v25 = vrot.slane %v1056_v58, 1  ;;  %v4940_v46 = vrot.slane %v3286_v2, 1  ;;  %v1612_v52 = vmul.f32 %v2954_v23, %v3301_v1 }
  0x47   : > { %v1414_v26 = vrot.slane %v1300_v20, 2  ;;  %v4939_v41 = vrot.slane %v3298_v31, 2  ;;  %v2039_v37 = vadd.f32 %v1932_v48, %v1795_v39  ;;  %v943_v5 = vadd.f32 %v860_v21, %v698_v24 }
  0x48   : > { %v3315_v53 = vmul.f32 %v2954_v23, %v3307_v33  ;;  %v1856_v59 = vmul.f32 %v3006_v51, %v3301_v1  ;;  %v1172_v35 = vsel %vm567_vm1, %v1170_v25, %v4940_v46  ;;  %v1535_v13 = vmul.f32 %v2940_v17, %v3301_v1 }
  0x49   : > { %v1726_v42 = vrot.slane %v1612_v52, 1  ;;  %v3326_v48 = vmul.f32 %v3006_v51, %v3307_v33  ;;  %v2078_v6 = vadd.f32 %v3094_v3, %v2039_v37  ;;  %v1011_v0 = vadd.f32 %v979_v62, %v943_v5  ;;  %v3344_v5 = vld [vmem:[%s2922_s12 + $0x58] sm:$0x3] }
  0x4a   : > { %v1727_v58 = vrot.slane %v3315_v53, 1  ;;  %v1970_v55 = vrot.slane %v1856_v59, 2  ;;  %v1416_v20 = vsel %vm812_vm2, %v1414_v26, %v4939_v41  ;;  %v476_v24 = vmul.f32 %v2926_v10, %v3101_v28 }
  0x4b   : > { %v4941_v39 = vrot.slane %v3326_v48, 2  ;;  %v721_v21 = vmul.f32 %v2928_v11, %v3101_v28  ;;  %v2110_v25 = vmax.f32 %v2078_v6, 0.0  ;;  %v1255_v52 = vadd.f32 %v1172_v35, %v1011_v0 }
  0x4c   : > { %v1728_v62 = vsel %vm567_vm1, %v1726_v42, %v1727_v58  ;;  %v438_v37 = vmul.f32 %v2924_v9, %v2946_v19  ;;  %v576_v26 = vrot.slane %v476_v24, 1  ;;  %v964_v41 = vmul.f32 %v2934_v14, %v2991_v43 }
  0x4d   : > { %v821_v59 = vrot.slane %v721_v21, 2  ;;  %v1034_v46 = vmul.f32 %v2936_v15, %v3119_v60  ;;  %2743 = vmatprep.mubr.msk.f32.mxu0 %vm2148_vm3, %v2110_v25  ;;  %v1499_v28 = vadd.f32 %v1416_v20, %v1255_v52  ;;  %v1972_v35 = vsel %vm812_vm2, %v1970_v55, %v4941_v39 }
  0x4e   : > { %v1278_v19 = vmul.f32 %v2938_v16, %v3119_v60  ;;  %v1590_v42 = vmul.f32 %v2954_v23, %v3344_v5  ;;  %v577_v6 = vsel %vm567_vm1, %v574_v27, %v576_v26  ;;  %v1834_v20 = vmul.f32 %v3006_v51, %v3344_v5 }
  0x4f   : > { %v822_v0 = vsel %vm812_vm2, %v819_v57, %v821_v59  ;;  %v1133_v24 = vrot.slane %v1034_v46, 1  ;;  %v1567_v21 = vadd.f32 %v1535_v13, %v1499_v28  ;;  %v683_v55 = vadd.f32 %v577_v6, %v438_v37 }
  0x50   : > { %v1377_v25 = vrot.slane %v1278_v19, 2  ;;  %v1689_v52 = vrot.slane %v1590_v42, 1  ;;  %v1520_v40 = vmul.f32 %v2940_v17, %v3233_v30  ;;  %v1933_v27 = vrot.slane %v1834_v20, 2 }
  0x51   : > { %v1134_v39 = vsel %vm567_vm1, %v1131_v56, %v1133_v24  ;;  %v500_v50 = vmul.f32 %v2926_v10, %v3151_v47  ;;  %v1811_v57 = vadd.f32 %v1728_v62, %v1567_v21  ;;  %v928_v46 = vadd.f32 %v822_v0, %v683_v55 }
  0x52   : > { %v1378_v13 = vsel %vm812_vm2, %v1375_v63, %v1377_v25  ;;  %v454_v37 = vmul.f32 %v2924_v9, %v3038_v7  ;;  %v1690_v18 = vsel %vm567_vm1, %v1687_v44, %v1689_v52  ;;  %v1934_v56 = vsel %vm812_vm2, %v1931_v34, %v1933_v27 }
  0x53   : > { %v616_v26 = vrot.slane %v500_v50, 1  ;;  %v745_v62 = vmul.f32 %v2928_v11, %v3151_v47  ;;  %v2055_v59 = vadd.f32 %v1972_v35, %v1811_v57  ;;  %v996_v28 = vadd.f32 %v964_v41, %v928_v46 }
  0x54   : > { %v1058_v63 = vmul.f32 %v2936_v15, %v3167_v22  ;;  %v1302_v7 = vmul.f32 %v2938_v16, %v3167_v22  ;;  %v980_v44 = vmul.f32 %v2934_v14, %v3069_v45  ;;  %v1614_v47 = vmul.f32 %v2954_v23, %v3387_v8 }
  0x55   : > { %v617_v12 = vsel %vm567_vm1, %v614_v49, %v616_v26  ;;  %v861_v29 = vrot.slane %v745_v62, 2  ;;  %v2094_v34 = vadd.f32 %v3094_v3, %v2055_v59  ;;  %v1240_v41 = vadd.f32 %v1134_v39, %v996_v28 }
  0x56   : > { %v699_v35 = vadd.f32 %v617_v12, %v454_v37  ;;  %v1173_v19 = vrot.slane %v1058_v63, 1  ;;  %v1417_v6 = vrot.slane %v1302_v7, 2  ;;  %v1729_v61 = vrot.slane %v1614_v47, 1 }
  0x57   : > { %v862_v42 = vsel %vm812_vm2, %v859_v54, %v861_v29  ;;  %v1858_v49 = vmul.f32 %v3006_v51, %v3387_v8  ;;  %v2126_v0 = vmax.f32 %v2094_v34, 0.0  ;;  %v1484_v24 = vadd.f32 %v1378_v13, %v1240_v41 }
  0x58   : > { %v944_v20 = vadd.f32 %v862_v42, %v699_v35  ;;  %v1536_v21 = vmul.f32 %v2940_v17, %v3307_v33  ;;  %v4957_v55 = vrot.slane %v3286_v2, 1  ;;  %v4958_v25 = vrot.slane %v3298_v31, 2 }
  0x59   : > { %v1730_v54 = vsel %vm567_vm1, %v1727_v58, %v1729_v61  ;;  %v1973_v52 = vrot.slane %v1858_v49, 2  ;;  %2767 = vmatprep.mubr.msk.f32.mxu1 %vm2148_vm3, %v2126_v0  ;;  %v1552_v27 = vadd.f32 %v1520_v40, %v1484_v24  ;;  %v477_v57 = vmul.f32 %v2926_v10, %v2971_v32  ;;  %v3463_v49 = vld [vmem:[%s2922_s12 + $0x68] sm:$0xff] }
  0x5a   : > { %v1174_v39 = vsel %vm567_vm1, %v4957_v55, %v1173_v19  ;;  %v1418_v4 = vsel %vm812_vm2, %v4958_v25, %v1417_v6  ;;  %v1012_v50 = vadd.f32 %v980_v44, %v944_v20  ;;  %v3422_v2 = vmul.f32 %v2926_v10, %v2991_v43 }
  0x5b   : > { %v439_v31 = vmul.f32 %v2924_v9, %v2971_v32  ;;  %v722_v53 = vmul.f32 %v2928_v11, %v2971_v32  ;;  %v3430_v58 = vmul.f32 %v2928_v11, %v2991_v43  ;;  %v965_v40 = vmul.f32 %v2934_v14, %v3223_v36 }
  0x5c   : > { %v1796_v46 = vadd.f32 %v1690_v18, %v1552_v27  ;;  %v1256_v13 = vadd.f32 %v1174_v39, %v1012_v50  ;;  %v578_v37 = vrot.slane %v477_v57, 1  ;;  %v579_v26 = vrot.slane %v3422_v2, 1 }
  0x5d   : > { %v823_v62 = vrot.slane %v722_v53, 2  ;;  %v824_v59 = vrot.slane %v3430_v58, 2  ;;  %v1035_v28 = vmul.f32 %v2936_v15, %v3223_v36  ;;  %v3440_v32 = vmul.f32 %v2936_v15, %v3233_v30 }
  0x5e   : > { %v2040_v63 = vadd.f32 %v1934_v56, %v1796_v46  ;;  %v1500_v7 = vadd.f32 %v1418_v4, %v1256_v13  ;;  %v580_v18 = vsel %vm567_vm1, %v578_v37, %v579_v26  ;;  %v1279_v12 = vmul.f32 %v2938_v16, %v3223_v36  ;;  %v3453_v56 = vld [vmem:[%s2922_s12 + $0x60] sm:$0xff] }
  0x5f   : > { %v684_v29 = vadd.f32 %v580_v18, %v439_v31  ;;  %v825_v44 = vsel %vm812_vm2, %v823_v62, %v824_v59  ;;  %v1135_v47 = vrot.slane %v1035_v28, 1  ;;  %v1136_v34 = vrot.slane %v3440_v32, 1 }
  0x60   : > { %v2079_v41 = vadd.f32 %v3094_v3, %v2040_v63  ;;  %v1568_v35 = vadd.f32 %v1536_v21, %v1500_v7  ;;  %v3457_v19 = vmul.f32 %v2938_v16, %v3233_v30  ;;  %v1379_v42 = vrot.slane %v1279_v12, 2 }
  0x61   : > { %v4959_v6 = vrot.slane %v3326_v48, 2  ;;  %v929_v0 = vadd.f32 %v825_v44, %v684_v29  ;;  %v1137_v24 = vsel %vm567_vm1, %v1135_v47, %v1136_v34  ;;  %v1591_v20 = vmul.f32 %v2954_v23, %v3453_v56 }
  0x62   : > { %v2111_v21 = vmax.f32 %v2079_v41, 0.0  ;;  %v1812_v55 = vadd.f32 %v1730_v54, %v1568_v35  ;;  %v1380_v39 = vrot.slane %v3457_v19, 2  ;;  %v3473_v25 = vmul.f32 %v2954_v23, %v3463_v49  ;;  %v3617_v19 = vld [vmem:[%s2922_s12 + $0x130] sm:$0x3] }
  0x63   : > { %v1974_v61 = vsel %vm812_vm2, %v4959_v6, %v1973_v52  ;;  %v997_v48 = vadd.f32 %v965_v40, %v929_v0  ;;  %v1691_v4 = vrot.slane %v1591_v20, 1  ;;  %v1835_v52 = vmul.f32 %v3006_v51, %v3453_v56 }
  0x64   : > { %v3479_v27 = vmul.f32 %v3006_v51, %v3463_v49  ;;  %2744 = vmatmul.mubr.msk.f32.gmra.mrb[2].mxu0 %vm2148_vm3, %v2111_v21  ;;  %v2056_v50 = vadd.f32 %v1974_v61, %v1812_v55  ;;  %v1381_v54 = vsel %vm812_vm2, %v1379_v42, %v1380_v39  ;;  %v1521_v57 = vmul.f32 %v2940_v17, %v3453_v56 }
  0x65   : > { %v1692_v31 = vrot.slane %v3473_v25, 1  ;;  %v1241_v53 = vadd.f32 %v1137_v24, %v997_v48  ;;  %v1935_v40 = vrot.slane %v1835_v52, 2  ;;  %v501_v13 = vmul.f32 %v2926_v10, %v3065_v38  ;;  %v3531_v48 = vld [vmem:[%s2922_s12 + $0x120] sm:$0xff] }
  0x66   : > { %v1936_v46 = vrot.slane %v3479_v27, 2  ;;  %v2095_v37 = vadd.f32 %v3094_v3, %v2056_v50  ;;  %v455_v62 = vmul.f32 %v2924_v9, %v3065_v38  ;;  %v3496_v28 = vmul.f32 %v2926_v10, %v3069_v45 }
  0x67   : > { %v746_v63 = vmul.f32 %v2928_v11, %v3065_v38  ;;  %v1485_v7 = vadd.f32 %v1381_v54, %v1241_v53  ;;  %v1693_v18 = vsel %vm567_vm1, %v1691_v4, %v1692_v31  ;;  %v618_v12 = vrot.slane %v501_v13, 1  ;;  %v3537_v54 = vld [vmem:[%s2922_s12 + $0x128] sm:$0xff] }
  0x68   : > { %v3505_v29 = vmul.f32 %v2928_v11, %v3069_v45  ;;  %v2127_v44 = vmax.f32 %v2095_v37, 0.0  ;;  %v1937_v47 = vsel %vm812_vm2, %v1935_v40, %v1936_v46  ;;  %v619_v41 = vrot.slane %v3496_v28, 1 }
  0x69   : > { %v863_v38 = vrot.slane %v746_v63, 2  ;;  %v1553_v35 = vadd.f32 %v1521_v57, %v1485_v7  ;;  %v1059_v6 = vmul.f32 %v2936_v15, %v3301_v1  ;;  %v3516_v61 = vmul.f32 %v2936_v15, %v3307_v33 }
  0x6a   : > { %v864_v42 = vrot.slane %v3505_v29, 2  ;;  %2768 = vmatmul.mubr.msk.f32.gmra.mrb[2].mxu1 %vm2148_vm3, %v2127_v44  ;;  %v620_v0 = vsel %vm567_vm1, %v618_v12, %v619_v41  ;;  %v981_v24 = vmul.f32 %v2934_v14, %v3301_v1  ;;  %v1303_v20 = vmul.f32 %v2938_v16, %v3301_v1 }
  0x6b   : > { %v3528_v21 = vmul.f32 %v2938_v16, %v3307_v33  ;;  %v1797_v55 = vadd.f32 %v1693_v18, %v1553_v35  ;;  %v700_v4 = vadd.f32 %v620_v0, %v455_v62  ;;  %v1175_v50 = vrot.slane %v1059_v6, 1 }
  0x6c   : > { %v865_v52 = vsel %vm812_vm2, %v863_v38, %v864_v42  ;;  %v4943_v57 = vrot.slane %v3516_v61, 1  ;;  %v1419_v53 = vrot.slane %v1303_v20, 2  ;;  %v1615_v13 = vmul.f32 %v2954_v23, %v3531_v48 }
  0x6d   : > { %v4942_v40 = vrot.slane %v3528_v21, 2  ;;  %v2041_v37 = vadd.f32 %v1937_v47, %v1797_v55  ;;  %v945_v63 = vadd.f32 %v865_v52, %v700_v4  ;;  %v3545_v62 = vmul.f32 %v2954_v23, %v3537_v54 }
  0x6e   : > { %v1859_v7 = vmul.f32 %v3006_v51, %v3531_v48  ;;  %v1177_v18 = vsel %vm567_vm1, %v1175_v50, %v4943_v57  ;;  %v1537_v12 = vmul.f32 %v2940_v17, %v3531_v48  ;;  %v1731_v44 = vrot.slane %v1615_v13, 1 }
  0x6f   : > { %v3556_v47 = vmul.f32 %v3006_v51, %v3537_v54  ;;  %v2080_v38 = vadd.f32 %v3094_v3, %v2041_v37  ;;  %v1013_v35 = vadd.f32 %v981_v24, %v945_v63  ;;  %v1732_v6 = vrot.slane %v3545_v62, 1  ;;  %v3574_v63 = vld [vmem:[%s2922_s12 + $0x70] sm:$0x3] }
  0x70   : > { %v1975_v0 = vrot.slane %v1859_v7, 2  ;;  %v1421_v20 = vsel %vm812_vm2, %v1419_v53, %v4942_v40  ;;  %v479_v4 = vmul.f32 %v2926_v10, %v3119_v60  ;;  %v724_v52 = vmul.f32 %v2928_v11, %v3119_v60 }
  0x71   : > { %v4944_v55 = vrot.slane %v3556_v47, 2  ;;  %v2112_v50 = vmax.f32 %v2080_v38, 0.0  ;;  %v1257_v13 = vadd.f32 %v1177_v18, %v1013_v35  ;;  %v1733_v24 = vsel %vm567_vm1, %v1731_v44, %v1732_v6 }
  0x72   : > { %v440_v37 = vmul.f32 %v2924_v9, %v2991_v43  ;;  %v581_v53 = vrot.slane %v479_v4, 1  ;;  %v826_v7 = vrot.slane %v724_v52, 2  ;;  %v966_v40 = vmul.f32 %v2934_v14, %v3233_v30 }
  0x73   : > { %v1037_v57 = vmul.f32 %v2936_v15, %v3344_v5  ;;  %2746 = vmatprep.mubr.msk.f32.mxu0 %vm2148_vm3, %v2112_v50  ;;  %v1501_v60 = vadd.f32 %v1421_v20, %v1257_v13  ;;  %v1977_v18 = vsel %vm812_vm2, %v1975_v0, %v4944_v55  ;;  %v1281_v43 = vmul.f32 %v2938_v16, %v3344_v5 }
  0x74   : > { %v1593_v44 = vmul.f32 %v2954_v23, %v3574_v63  ;;  %v582_v38 = vsel %vm567_vm1, %v579_v26, %v581_v53  ;;  %v827_v35 = vsel %vm812_vm2, %v824_v59, %v826_v7  ;;  %v1837_v20 = vmul.f32 %v3006_v51, %v3574_v63 }
  0x75   : > { %v1138_v4 = vrot.slane %v1037_v57, 1  ;;  %v1569_v52 = vadd.f32 %v1537_v12, %v1501_v60  ;;  %v685_v0 = vadd.f32 %v582_v38, %v440_v37  ;;  %v1382_v50 = vrot.slane %v1281_v43, 2 }
  0x76   : > { %v1694_v13 = vrot.slane %v1593_v44, 1  ;;  %v1522_v2 = vmul.f32 %v2940_v17, %v3463_v49  ;;  %v1938_v26 = vrot.slane %v1837_v20, 2  ;;  %v503_v58 = vmul.f32 %v2926_v10, %v3167_v22 }
  0x77   : > { %v1139_v55 = vsel %vm567_vm1, %v1136_v34, %v1138_v4  ;;  %v1813_v59 = vadd.f32 %v1733_v24, %v1569_v52  ;;  %v930_v57 = vadd.f32 %v827_v35, %v685_v0  ;;  %v1383_v12 = vsel %vm812_vm2, %v1380_v39, %v1382_v50 }
  0x78   : > { %v456_v37 = vmul.f32 %v2924_v9, %v3069_v45  ;;  %v1695_v32 = vsel %vm567_vm1, %v1692_v31, %v1694_v13  ;;  %v1939_v34 = vsel %vm812_vm2, %v1936_v46, %v1938_v26  ;;  %v621_v53 = vrot.slane %v503_v58, 1 }
  0x79   : > { %v748_v24 = vmul.f32 %v2928_v11, %v3167_v22  ;;  %v2057_v7 = vadd.f32 %v1977_v18, %v1813_v59  ;;  %v998_v60 = vadd.f32 %v966_v40, %v930_v57  ;;  %v1061_v39 = vmul.f32 %v2936_v15, %v3387_v8 }
  0x7a   : > { %v1305_v45 = vmul.f32 %v2938_v16, %v3387_v8  ;;  %v622_v25 = vsel %vm567_vm1, %v619_v41, %v621_v53  ;;  %v982_v31 = vmul.f32 %v2934_v14, %v3307_v33  ;;  %v1617_v22 = vmul.f32 %v2954_v23, %v3617_v19 }
  0x7b   : > { %v866_v27 = vrot.slane %v748_v24, 2  ;;  %v2096_v46 = vadd.f32 %v3094_v3, %v2057_v7  ;;  %v1242_v40 = vadd.f32 %v1139_v55, %v998_v60  ;;  %v701_v18 = vadd.f32 %v622_v25, %v456_v37 }
  0x7c   : > { %v1178_v43 = vrot.slane %v1061_v39, 1  ;;  %v1422_v38 = vrot.slane %v1305_v45, 2  ;;  %v1734_v28 = vrot.slane %v1617_v22, 1  ;;  %v1861_v41 = vmul.f32 %v3006_v51, %v3617_v19 }
  0x7d   : > { %v867_v44 = vsel %vm812_vm2, %v864_v42, %v866_v27  ;;  %v2128_v35 = vmax.f32 %v2096_v46, 0.0  ;;  %v1486_v4 = vadd.f32 %v1383_v12, %v1242_v40  ;;  %v1538_v52 = vmul.f32 %v2940_v17, %v3537_v54 }
  0x7e   : > { %v946_v20 = vadd.f32 %v867_v44, %v701_v18  ;;  %v4960_v0 = vrot.slane %v3516_v61, 1  ;;  %v4961_v50 = vrot.slane %v3528_v21, 2  ;;  %v1735_v42 = vsel %vm567_vm1, %v1732_v6, %v1734_v28 }
  0x7f   : > { %v1978_v13 = vrot.slane %v1861_v41, 2  ;;  %2770 = vmatprep.mubr.msk.f32.mxu1 %vm2148_vm3, %v2128_v35  ;;  %v1554_v26 = vadd.f32 %v1522_v2, %v1486_v4  ;;  %v480_v59 = vmul.f32 %v2926_v10, %v3223_v36  ;;  %v3652_v61 = vmul.f32 %v2926_v10, %v3233_v30  ;;  %v3693_v41 = vld [vmem:[%s2922_s12 + $0x80] sm:$0xff] }
  0x80   : > { %v1179_v55 = vsel %vm567_vm1, %v4960_v0, %v1178_v43  ;;  %v1423_v29 = vsel %vm812_vm2, %v4961_v50, %v1422_v38  ;;  %v1014_v58 = vadd.f32 %v982_v31, %v946_v20  ;;  %v441_v21 = vmul.f32 %v2924_v9, %v3223_v36 }
  0x81   : > { %v725_v62 = vmul.f32 %v2928_v11, %v3223_v36  ;;  %v3660_v6 = vmul.f32 %v2928_v11, %v3233_v30  ;;  %v967_v2 = vmul.f32 %v2934_v14, %v3453_v56  ;;  %v1798_v57 = vadd.f32 %v1695_v32, %v1554_v26 }
  0x82   : > { %v1258_v12 = vadd.f32 %v1179_v55, %v1014_v58  ;;  %v583_v37 = vrot.slane %v480_v59, 1  ;;  %v584_v53 = vrot.slane %v3652_v61, 1  ;;  %v1038_v60 = vmul.f32 %v2936_v15, %v3453_v56 }
  0x83   : > { %v828_v24 = vrot.slane %v725_v62, 2  ;;  %v829_v7 = vrot.slane %v3660_v6, 2  ;;  %v3670_v36 = vmul.f32 %v2936_v15, %v3463_v49  ;;  %v2042_v39 = vadd.f32 %v1939_v34, %v1798_v57  ;;  %v3683_v34 = vld [vmem:[%s2922_s12 + $0x78] sm:$0xff] }
  0x84   : > { %v1502_v45 = vadd.f32 %v1423_v29, %v1258_v12  ;;  %v585_v32 = vsel %vm567_vm1, %v583_v37, %v584_v53  ;;  %v1282_v25 = vmul.f32 %v2938_v16, %v3453_v56  ;;  %v1140_v22 = vrot.slane %v1038_v60, 1 }
  0x85   : > { %v686_v27 = vadd.f32 %v585_v32, %v441_v21  ;;  %v830_v31 = vsel %vm812_vm2, %v828_v24, %v829_v7  ;;  %v1141_v46 = vrot.slane %v3670_v36, 1  ;;  %v2081_v40 = vadd.f32 %v3094_v3, %v2042_v39 }
  0x86   : > { %v1570_v18 = vadd.f32 %v1538_v52, %v1502_v45  ;;  %v3687_v43 = vmul.f32 %v2938_v16, %v3463_v49  ;;  %v1384_v44 = vrot.slane %v1282_v25, 2  ;;  %v4962_v38 = vrot.slane %v3556_v47, 2 }
  0x87   : > { %v931_v35 = vadd.f32 %v830_v31, %v686_v27  ;;  %v1142_v4 = vsel %vm567_vm1, %v1140_v22, %v1141_v46  ;;  %v1594_v20 = vmul.f32 %v2954_v23, %v3683_v34  ;;  %v2113_v52 = vmax.f32 %v2081_v40, 0.0 }
  0x88   : > { %v1979_v28 = vsel %vm812_vm2, %v4962_v38, %v1978_v13  ;;  %v1814_v0 = vadd.f32 %v1735_v42, %v1570_v18  ;;  %v1385_v55 = vrot.slane %v3687_v43, 2  ;;  %v3703_v50 = vmul.f32 %v2954_v23, %v3693_v41  ;;  %v3847_v43 = vld [vmem:[%s2922_s12 + $0x148] sm:$0x3] }
  0x89   : > { %v999_v47 = vadd.f32 %v967_v2, %v931_v35  ;;  %v1696_v29 = vrot.slane %v1594_v20, 1  ;;  %v1838_v13 = vmul.f32 %v3006_v51, %v3683_v34  ;;  %v3709_v26 = vmul.f32 %v3006_v51, %v3693_v41  ;;  %2747 = vmatmul.mubr.msk.f32.gmra.mrb[4].mxu0 %vm2148_vm3, %v2113_v52 }
  0x8a   : > { %v2058_v58 = vadd.f32 %v1979_v28, %v1814_v0  ;;  %v1386_v42 = vsel %vm812_vm2, %v1384_v44, %v1385_v55  ;;  %v1523_v59 = vmul.f32 %v2940_v17, %v3683_v34  ;;  %v1697_v21 = vrot.slane %v3703_v50, 1 }
  0x8b   : > { %v1243_v62 = vadd.f32 %v1142_v4, %v999_v47  ;;  %v1940_v2 = vrot.slane %v1838_v13, 2  ;;  %v1941_v57 = vrot.slane %v3709_v26, 2  ;;  %v504_v12 = vmul.f32 %v2926_v10, %v3301_v1  ;;  %v3761_v47 = vld [vmem:[%s2922_s12 + $0x138] sm:$0xff] }
  0x8c   : > { %v2097_v37 = vadd.f32 %v3094_v3, %v2058_v58  ;;  %v457_v24 = vmul.f32 %v2924_v9, %v3301_v1  ;;  %v3726_v60 = vmul.f32 %v2926_v10, %v3307_v33  ;;  %v749_v39 = vmul.f32 %v2928_v11, %v3301_v1 }
  0x8d   : > { %v1487_v45 = vadd.f32 %v1386_v42, %v1243_v62  ;;  %v1698_v32 = vsel %vm567_vm1, %v1696_v29, %v1697_v21  ;;  %v623_v25 = vrot.slane %v504_v12, 1  ;;  %v3735_v27 = vmul.f32 %v2928_v11, %v3307_v33  ;;  %v3767_v42 = vld [vmem:[%s2922_s12 + $0x140] sm:$0xff] }
  0x8e   : > { %v2129_v31 = vmax.f32 %v2097_v37, 0.0  ;;  %v1942_v22 = vsel %vm812_vm2, %v1940_v2, %v1941_v57  ;;  %v624_v40 = vrot.slane %v3726_v60, 1  ;;  %v868_v1 = vrot.slane %v749_v39, 2 }
  0x8f   : > { %v1555_v18 = vadd.f32 %v1523_v59, %v1487_v45  ;;  %v869_v44 = vrot.slane %v3735_v27, 2  ;;  %v1062_v38 = vmul.f32 %v2936_v15, %v3531_v48  ;;  %v3746_v28 = vmul.f32 %v2936_v15, %v3537_v54 }
  0x90   : > { %2771 = vmatmul.mubr.msk.f32.gmra.mrb[4].mxu1 %vm2148_vm3, %v2129_v31  ;;  %v625_v35 = vsel %vm567_vm1, %v623_v25, %v624_v40  ;;  %v983_v4 = vmul.f32 %v2934_v14, %v3531_v48  ;;  %v1306_v20 = vmul.f32 %v2938_v16, %v3531_v48  ;;  %v3758_v52 = vmul.f32 %v2938_v16, %v3537_v54 }
  0x91   : > { %v1799_v0 = vadd.f32 %v1698_v32, %v1555_v18  ;;  %v702_v29 = vadd.f32 %v625_v35, %v457_v24  ;;  %v870_v13 = vsel %vm812_vm2, %v868_v1, %v869_v44  ;;  %v1180_v58 = vrot.slane %v1062_v38, 1 }
  0x92   : > { %v1181_v59 = vrot.slane %v3746_v28, 1  ;;  %v1424_v62 = vrot.slane %v1306_v20, 2  ;;  %v4945_v2 = vrot.slane %v3758_v52, 2  ;;  %v1618_v12 = vmul.f32 %v2954_v23, %v3761_v47 }
  0x93   : > { %v2043_v37 = vadd.f32 %v1942_v22, %v1799_v0  ;;  %v947_v39 = vadd.f32 %v870_v13, %v702_v29  ;;  %v3775_v24 = vmul.f32 %v2954_v23, %v3767_v42  ;;  %v1862_v45 = vmul.f32 %v3006_v51, %v3761_v47 }
  0x94   : > { %v1182_v32 = vsel %vm567_vm1, %v1180_v58, %v1181_v59  ;;  %v1539_v25 = vmul.f32 %v2940_v17, %v3761_v47  ;;  %v1736_v31 = vrot.slane %v1618_v12, 1  ;;  %v3786_v22 = vmul.f32 %v3006_v51, %v3767_v42 }
  0x95   : > { %v2082_v1 = vadd.f32 %v3094_v3, %v2043_v37  ;;  %v1015_v18 = vadd.f32 %v983_v4, %v947_v39  ;;  %v1737_v38 = vrot.slane %v3775_v24, 1  ;;  %v1980_v35 = vrot.slane %v1862_v45, 2  ;;  %v3804_v37 = vld [vmem:[%s2922_s12 + $0x88] sm:$0x3] }
  0x96   : > { %v1426_v20 = vsel %vm812_vm2, %v1424_v62, %v4945_v2  ;;  %v4946_v0 = vrot.slane %v3786_v22, 2  ;;  %v482_v29 = vmul.f32 %v2926_v10, %v3344_v5  ;;  %v727_v13 = vmul.f32 %v2928_v11, %v3344_v5 }
  0x97   : > { %v2114_v58 = vmax.f32 %v2082_v1, 0.0  ;;  %v1259_v12 = vadd.f32 %v1182_v32, %v1015_v18  ;;  %v1738_v3 = vsel %vm567_vm1, %v1736_v31, %v1737_v38  ;;  %v442_v4 = vmul.f32 %v2924_v9, %v3233_v30 }
  0x98   : > { %v586_v62 = vrot.slane %v482_v29, 1  ;;  %v831_v39 = vrot.slane %v727_v13, 2  ;;  %v968_v45 = vmul.f32 %v2934_v14, %v3463_v49  ;;  %v1040_v2 = vmul.f32 %v2936_v15, %v3574_v63 }
  0x99   : > { %2749 = vmatprep.mubr.msk.f32.mxu0 %vm2148_vm3, %v2114_v58  ;;  %v1503_v5 = vadd.f32 %v1426_v20, %v1259_v12  ;;  %v1982_v32 = vsel %vm812_vm2, %v1980_v35, %v4946_v0  ;;  %v1284_v30 = vmul.f32 %v2938_v16, %v3574_v63  ;;  %v1596_v31 = vmul.f32 %v2954_v23, %v3804_v37 }
  0x9a   : > { %v587_v1 = vsel %vm567_vm1, %v584_v53, %v586_v62  ;;  %v832_v18 = vsel %vm812_vm2, %v829_v7, %v831_v39  ;;  %v1143_v29 = vrot.slane %v1040_v2, 1  ;;  %v1840_v20 = vmul.f32 %v3006_v51, %v3804_v37 }
  0x9b   : > { %v1571_v13 = vadd.f32 %v1539_v25, %v1503_v5  ;;  %v687_v35 = vadd.f32 %v587_v1, %v442_v4  ;;  %v1387_v58 = vrot.slane %v1284_v30, 2  ;;  %v1699_v12 = vrot.slane %v1596_v31, 1 }
  0x9c   : > { %v1144_v0 = vsel %vm567_vm1, %v1141_v46, %v1143_v29  ;;  %v1524_v61 = vmul.f32 %v2940_v17, %v3693_v41  ;;  %v1943_v53 = vrot.slane %v1840_v20, 2  ;;  %v506_v6 = vmul.f32 %v2926_v10, %v3387_v8 }
  0x9d   : > { %v1815_v7 = vadd.f32 %v1738_v3, %v1571_v13  ;;  %v932_v2 = vadd.f32 %v832_v18, %v687_v35  ;;  %v1388_v25 = vsel %vm812_vm2, %v1385_v55, %v1387_v58  ;;  %v458_v4 = vmul.f32 %v2924_v9, %v3307_v33 }
  0x9e   : > { %v1700_v36 = vsel %vm567_vm1, %v1697_v21, %v1699_v12  ;;  %v1944_v46 = vsel %vm812_vm2, %v1941_v57, %v1943_v53  ;;  %v626_v62 = vrot.slane %v506_v6, 1  ;;  %v751_v3 = vmul.f32 %v2928_v11, %v3387_v8  ;;  %v3863_v57 = vld [vmem:[%s4935_s3] ss:$0 sm:$0xff] }
  0x9f   : > { %v2059_v39 = vadd.f32 %v1982_v32, %v1815_v7  ;;  %v1000_v5 = vadd.f32 %v968_v45, %v932_v2  ;;  %v1064_v55 = vmul.f32 %v2936_v15, %v3617_v19  ;;  %v1308_v33 = vmul.f32 %v2938_v16, %v3617_v19 }
  0xa0   : > { %v627_v50 = vsel %vm567_vm1, %v624_v40, %v626_v62  ;;  %v871_v26 = vrot.slane %v751_v3, 2  ;;  %v984_v21 = vmul.f32 %v2934_v14, %v3537_v54  ;;  %v1620_v8 = vmul.f32 %v2954_v23, %v3847_v43 }
  0xa1   : > { %v2098_v45 = vadd.f32 %v3863_v57, %v2059_v39  ;;  %v1244_v32 = vadd.f32 %v1144_v0, %v1000_v5  ;;  %v703_v30 = vadd.f32 %v627_v50, %v458_v4  ;;  %v1183_v31 = vrot.slane %v1064_v55, 1 }
  0xa2   : > { %v872_v60 = vsel %vm812_vm2, %v869_v44, %v871_v26  ;;  %v1427_v40 = vrot.slane %v1308_v33, 2  ;;  %v1739_v1 = vrot.slane %v1620_v8, 1  ;;  %v1864_v18 = vmul.f32 %v3006_v51, %v3847_v43 }
  0xa3   : > { %v2130_v29 = vmax.f32 %v2098_v45, 0.0  ;;  %v1488_v20 = vadd.f32 %v1388_v25, %v1244_v32  ;;  %v948_v13 = vadd.f32 %v872_v60, %v703_v30  ;;  %v1540_v35 = vmul.f32 %v2940_v17, %v3767_v42 }
  0xa4   : > { %v1184_v0 = vsel %vm567_vm1, %v1181_v59, %v1183_v31  ;;  %v4963_v58 = vrot.slane %v3758_v52, 2  ;;  %v1740_v44 = vsel %vm567_vm1, %v1737_v38, %v1739_v1  ;;  %v1983_v12 = vrot.slane %v1864_v18, 2  ;;  %v3928_v1 = vld [vmem:[%s2922_s12 + $0x98] sm:$0xff] }
  0xa5   : > { %2773 = vmatprep.mubr.msk.f32.mxu1 %vm2148_vm3, %v2130_v29  ;;  %v1556_v53 = vadd.f32 %v1524_v61, %v1488_v20  ;;  %v1016_v6 = vadd.f32 %v984_v21, %v948_v13  ;;  %v483_v7 = vmul.f32 %v2926_v10, %v3453_v56  ;;  %v3887_v28 = vmul.f32 %v2926_v10, %v3463_v49 }
  0xa6   : > { %v1428_v27 = vsel %vm812_vm2, %v4963_v58, %v1427_v40  ;;  %v443_v52 = vmul.f32 %v2924_v9, %v3453_v56  ;;  %v728_v59 = vmul.f32 %v2928_v11, %v3453_v56  ;;  %v3895_v24 = vmul.f32 %v2928_v11, %v3463_v49 }
  0xa7   : > { %v969_v38 = vmul.f32 %v2934_v14, %v3683_v34  ;;  %v1800_v61 = vadd.f32 %v1700_v36, %v1556_v53  ;;  %v1260_v2 = vadd.f32 %v1184_v0, %v1016_v6  ;;  %v588_v25 = vrot.slane %v483_v7, 1 }
  0xa8   : > { %v589_v4 = vrot.slane %v3887_v28, 1  ;;  %v833_v62 = vrot.slane %v728_v59, 2  ;;  %v834_v3 = vrot.slane %v3895_v24, 2  ;;  %v1041_v39 = vmul.f32 %v2936_v15, %v3683_v34 }
  0xa9   : > { %v3905_v56 = vmul.f32 %v2936_v15, %v3693_v41  ;;  %v2044_v5 = vadd.f32 %v1944_v46, %v1800_v61  ;;  %v1504_v55 = vadd.f32 %v1428_v27, %v1260_v2  ;;  %v1285_v33 = vmul.f32 %v2938_v16, %v3683_v34  ;;  %v3918_v46 = vld [vmem:[%s2922_s12 + $0x90] sm:$0xff] }
  0xaa   : > { %v590_v36 = vsel %vm567_vm1, %v588_v25, %v589_v4  ;;  %v835_v26 = vsel %vm812_vm2, %v833_v62, %v834_v3  ;;  %v1145_v21 = vrot.slane %v1041_v39, 1  ;;  %v3922_v30 = vmul.f32 %v2938_v16, %v3693_v41 }
  0xab   : > { %v688_v50 = vadd.f32 %v590_v36, %v443_v52  ;;  %v1146_v8 = vrot.slane %v3905_v56, 1  ;;  %v2083_v45 = vadd.f32 %v3863_v57, %v2044_v5  ;;  %v1572_v32 = vadd.f32 %v1540_v35, %v1504_v55 }
  0xac   : > { %v1389_v31 = vrot.slane %v1285_v33, 2  ;;  %v4964_v60 = vrot.slane %v3786_v22, 2  ;;  %v1597_v20 = vmul.f32 %v2954_v23, %v3918_v46  ;;  %v1390_v0 = vrot.slane %v3922_v30, 2  ;;  %v4082_v30 = vld [vmem:[%s2922_s12 + $0x160] sm:$0x3] }
  0xad   : > { %v933_v18 = vadd.f32 %v835_v26, %v688_v50  ;;  %v1147_v29 = vsel %vm567_vm1, %v1145_v21, %v1146_v8  ;;  %v2115_v13 = vmax.f32 %v2083_v45, 0.0  ;;  %v1816_v35 = vadd.f32 %v1740_v44, %v1572_v32 }
  0xae   : > { %v1984_v40 = vsel %vm812_vm2, %v4964_v60, %v1983_v12  ;;  %v3938_v58 = vmul.f32 %v2954_v23, %v3928_v1  ;;  %v1701_v27 = vrot.slane %v1597_v20, 1  ;;  %v1841_v12 = vmul.f32 %v3006_v51, %v3918_v46 }
  0xaf   : > { %v1001_v22 = vadd.f32 %v969_v38, %v933_v18  ;;  %v3944_v53 = vmul.f32 %v3006_v51, %v3928_v1  ;;  %2750 = vmatmul.mubr.msk.f32.gmra.mrb[6].mxu0 %vm2148_vm3, %v2115_v13  ;;  %v2060_v6 = vadd.f32 %v1984_v40, %v1816_v35  ;;  %v1391_v44 = vsel %vm812_vm2, %v1389_v31, %v1390_v0 }
  0xb0   : > { %v1525_v7 = vmul.f32 %v2940_v17, %v3918_v46  ;;  %v1702_v52 = vrot.slane %v3938_v58, 1  ;;  %v1945_v38 = vrot.slane %v1841_v12, 2  ;;  %v507_v2 = vmul.f32 %v2926_v10, %v3531_v48 }
  0xb1   : > { %v1245_v59 = vadd.f32 %v1147_v29, %v1001_v22  ;;  %v1946_v61 = vrot.slane %v3944_v53, 2  ;;  %v2099_v25 = vadd.f32 %v3863_v57, %v2060_v6  ;;  %v459_v62 = vmul.f32 %v2924_v9, %v3531_v48  ;;  %v3996_v22 = vld [vmem:[%s2922_s12 + $0x150] sm:$0xff] }
  0xb2   : > { %v3961_v39 = vmul.f32 %v2926_v10, %v3537_v54  ;;  %v752_v5 = vmul.f32 %v2928_v11, %v3531_v48  ;;  %v1703_v36 = vsel %vm567_vm1, %v1701_v27, %v1702_v52  ;;  %v628_v33 = vrot.slane %v507_v2, 1 }
  0xb3   : > { %v1489_v55 = vadd.f32 %v1391_v44, %v1245_v59  ;;  %v3970_v50 = vmul.f32 %v2928_v11, %v3537_v54  ;;  %v2131_v26 = vmax.f32 %v2099_v25, 0.0  ;;  %v1947_v21 = vsel %vm812_vm2, %v1945_v38, %v1946_v61  ;;  %v4002_v44 = vld [vmem:[%s2922_s12 + $0x158] sm:$0xff] }
  0xb4   : > { %v629_v45 = vrot.slane %v3961_v39, 1  ;;  %v873_v48 = vrot.slane %v752_v5, 2  ;;  %v1065_v60 = vmul.f32 %v2936_v15, %v3761_v47  ;;  %v3981_v40 = vmul.f32 %v2936_v15, %v3767_v42 }
  0xb5   : > { %v1557_v32 = vadd.f32 %v1525_v7, %v1489_v55  ;;  %v874_v31 = vrot.slane %v3970_v50, 2  ;;  %2774 = vmatmul.mubr.msk.f32.gmra.mrb[6].mxu1 %vm2148_vm3, %v2131_v26  ;;  %v985_v29 = vmul.f32 %v2934_v14, %v3761_v47  ;;  %v1309_v20 = vmul.f32 %v2938_v16, %v3761_v47 }
  0xb6   : > { %v630_v18 = vsel %vm567_vm1, %v628_v33, %v629_v45  ;;  %v3993_v13 = vmul.f32 %v2938_v16, %v3767_v42  ;;  %v1185_v6 = vrot.slane %v1065_v60, 1  ;;  %v4948_v7 = vrot.slane %v3981_v40, 1 }
  0xb7   : > { %v1801_v35 = vadd.f32 %v1703_v36, %v1557_v32  ;;  %v704_v27 = vadd.f32 %v630_v18, %v459_v62  ;;  %v875_v12 = vsel %vm812_vm2, %v873_v48, %v874_v31  ;;  %v1429_v59 = vrot.slane %v1309_v20, 2 }
  0xb8   : > { %v4947_v38 = vrot.slane %v3993_v13, 2  ;;  %v1621_v2 = vmul.f32 %v2954_v23, %v3996_v22  ;;  %v4010_v62 = vmul.f32 %v2954_v23, %v4002_v44  ;;  %v1865_v55 = vmul.f32 %v3006_v51, %v3996_v22 }
  0xb9   : > { %v2045_v25 = vadd.f32 %v1947_v21, %v1801_v35  ;;  %v949_v5 = vadd.f32 %v875_v12, %v704_v27  ;;  %v1187_v36 = vsel %vm567_vm1, %v1185_v6, %v4948_v7  ;;  %v1541_v33 = vmul.f32 %v2940_v17, %v3996_v22 }
  0xba   : > { %v1741_v26 = vrot.slane %v1621_v2, 1  ;;  %v4021_v21 = vmul.f32 %v3006_v51, %v4002_v44  ;;  %v1742_v60 = vrot.slane %v4010_v62, 1  ;;  %v1985_v18 = vrot.slane %v1865_v55, 2 }
  0xbb   : > { %v2084_v48 = vadd.f32 %v3863_v57, %v2045_v25  ;;  %v1017_v32 = vadd.f32 %v985_v29, %v949_v5  ;;  %v1431_v20 = vsel %vm812_vm2, %v1429_v59, %v4947_v38  ;;  %v485_v27 = vmul.f32 %v2926_v10, %v3574_v63  ;;  %v4039_v5 = vld [vmem:[%s2922_s12 + $0xa0] sm:$0x3] }
  0xbc   : > { %v4949_v35 = vrot.slane %v4021_v21, 2  ;;  %v730_v12 = vmul.f32 %v2928_v11, %v3574_v63  ;;  %v1743_v29 = vsel %vm567_vm1, %v1741_v26, %v1742_v60  ;;  %v444_v25 = vmul.f32 %v2924_v9, %v3463_v49 }
  0xbd   : > { %v2116_v6 = vmax.f32 %v2084_v48, 0.0  ;;  %v1261_v2 = vadd.f32 %v1187_v36, %v1017_v32  ;;  %v591_v59 = vrot.slane %v485_v27, 1  ;;  %v970_v38 = vmul.f32 %v2934_v14, %v3693_v41 }
  0xbe   : > { %v836_v55 = vrot.slane %v730_v12, 2  ;;  %v1043_v7 = vmul.f32 %v2936_v15, %v3804_v37  ;;  %v1987_v36 = vsel %vm812_vm2, %v1985_v18, %v4949_v35  ;;  %v1287_v49 = vmul.f32 %v2938_v16, %v3804_v37 }
  0xbf   : > { %2752 = vmatprep.mubr.msk.f32.mxu0 %vm2148_vm3, %v2116_v6  ;;  %v1505_v63 = vadd.f32 %v1431_v20, %v1261_v2  ;;  %v1599_v26 = vmul.f32 %v2954_v23, %v4039_v5  ;;  %v592_v48 = vsel %vm567_vm1, %v589_v4, %v591_v59  ;;  %v1843_v20 = vmul.f32 %v3006_v51, %v4039_v5 }
  0xc0   : > { %v837_v32 = vsel %vm812_vm2, %v834_v3, %v836_v55  ;;  %v1148_v27 = vrot.slane %v1043_v7, 1  ;;  %v689_v18 = vadd.f32 %v592_v48, %v444_v25  ;;  %v1392_v6 = vrot.slane %v1287_v49, 2 }
  0xc1   : > { %v1573_v12 = vadd.f32 %v1541_v33, %v1505_v63  ;;  %v1704_v2 = vrot.slane %v1599_v26, 1  ;;  %v1526_v28 = vmul.f32 %v2940_v17, %v3928_v1  ;;  %v1948_v4 = vrot.slane %v1843_v20, 2 }
  0xc2   : > { %v1149_v35 = vsel %vm567_vm1, %v1146_v8, %v1148_v27  ;;  %v509_v24 = vmul.f32 %v2926_v10, %v3617_v19  ;;  %v934_v7 = vadd.f32 %v837_v32, %v689_v18  ;;  %v1393_v33 = vsel %vm812_vm2, %v1390_v0, %v1392_v6 }
  0xc3   : > { %v1817_v3 = vadd.f32 %v1743_v29, %v1573_v12  ;;  %v460_v25 = vmul.f32 %v2924_v9, %v3537_v54  ;;  %v1705_v56 = vsel %vm567_vm1, %v1702_v52, %v1704_v2  ;;  %v1949_v8 = vsel %vm812_vm2, %v1946_v61, %v1948_v4 }
  0xc4   : > { %v631_v59 = vrot.slane %v509_v24, 1  ;;  %v754_v29 = vmul.f32 %v2928_v11, %v3617_v19  ;;  %v1002_v63 = vadd.f32 %v970_v38, %v934_v7  ;;  %v1067_v0 = vmul.f32 %v2936_v15, %v3847_v43 }
  0xc5   : > { %v2061_v55 = vadd.f32 %v1987_v36, %v1817_v3  ;;  %v1311_v54 = vmul.f32 %v2938_v16, %v3847_v43  ;;  %v986_v52 = vmul.f32 %v2934_v14, %v3767_v42  ;;  %v1623_v19 = vmul.f32 %v2954_v23, %v4082_v30 }
  0xc6   : > { %v632_v58 = vsel %vm567_vm1, %v629_v45, %v631_v59  ;;  %v876_v53 = vrot.slane %v754_v29, 2  ;;  %v1246_v38 = vadd.f32 %v1149_v35, %v1002_v63  ;;  %v1188_v49 = vrot.slane %v1067_v0, 1 }
  0xc7   : > { %v2100_v61 = vadd.f32 %v3863_v57, %v2061_v55  ;;  %v705_v36 = vadd.f32 %v632_v58, %v460_v25  ;;  %v1432_v48 = vrot.slane %v1311_v54, 2  ;;  %v1744_v39 = vrot.slane %v1623_v19, 1 }
  0xc8   : > { %v877_v26 = vsel %vm812_vm2, %v874_v31, %v876_v53  ;;  %v1867_v45 = vmul.f32 %v3006_v51, %v4082_v30  ;;  %v1490_v27 = vadd.f32 %v1393_v33, %v1246_v38  ;;  %v1542_v12 = vmul.f32 %v2940_v17, %v4002_v44 }
  0xc9   : > { %v2132_v32 = vmax.f32 %v2100_v61, 0.0  ;;  %v950_v20 = vadd.f32 %v877_v26, %v705_v36  ;;  %v4965_v18 = vrot.slane %v3981_v40, 1  ;;  %v4966_v6 = vrot.slane %v3993_v13, 2 }
  0xca   : > { %v1745_v31 = vsel %vm567_vm1, %v1742_v60, %v1744_v39  ;;  %v1988_v2 = vrot.slane %v1867_v45, 2  ;;  %v1558_v4 = vadd.f32 %v1526_v28, %v1490_v27  ;;  %v486_v3 = vmul.f32 %v2926_v10, %v3683_v34  ;;  %v4158_v45 = vld [vmem:[%s2922_s12 + $0xb0] sm:$0xff] }
  0xcb   : > { %v1189_v35 = vsel %vm567_vm1, %v4965_v18, %v1188_v49  ;;  %v1433_v50 = vsel %vm812_vm2, %v4966_v6, %v1432_v48  ;;  %2776 = vmatprep.mubr.msk.f32.mxu1 %vm2148_vm3, %v2132_v32  ;;  %v1018_v24 = vadd.f32 %v986_v52, %v950_v20  ;;  %v4117_v40 = vmul.f32 %v2926_v10, %v3693_v41 }
  0xcc   : > { %v445_v13 = vmul.f32 %v2924_v9, %v3683_v34  ;;  %v731_v62 = vmul.f32 %v2928_v11, %v3683_v34  ;;  %v4125_v60 = vmul.f32 %v2928_v11, %v3693_v41  ;;  %v971_v28 = vmul.f32 %v2934_v14, %v3918_v46 }
  0xcd   : > { %v1802_v7 = vadd.f32 %v1705_v56, %v1558_v4  ;;  %v1262_v33 = vadd.f32 %v1189_v35, %v1018_v24  ;;  %v593_v25 = vrot.slane %v486_v3, 1  ;;  %v594_v59 = vrot.slane %v4117_v40, 1 }
  0xce   : > { %v838_v29 = vrot.slane %v731_v62, 2  ;;  %v839_v55 = vrot.slane %v4125_v60, 2  ;;  %v1044_v63 = vmul.f32 %v2936_v15, %v3918_v46  ;;  %v4135_v34 = vmul.f32 %v2936_v15, %v3928_v1 }
  0xcf   : > { %v2046_v0 = vadd.f32 %v1949_v8, %v1802_v7  ;;  %v1506_v54 = vadd.f32 %v1433_v50, %v1262_v33  ;;  %v595_v56 = vsel %vm567_vm1, %v593_v25, %v594_v59  ;;  %v1288_v58 = vmul.f32 %v2938_v16, %v3918_v46  ;;  %v4148_v8 = vld [vmem:[%s2922_s12 + $0xa8] sm:$0xff] }
  0xd0   : > { %v690_v53 = vadd.f32 %v595_v56, %v445_v13  ;;  %v840_v52 = vsel %vm812_vm2, %v838_v29, %v839_v55  ;;  %v1150_v19 = vrot.slane %v1044_v63, 1  ;;  %v1151_v61 = vrot.slane %v4135_v34, 1 }
  0xd1   : > { %v2085_v38 = vadd.f32 %v3863_v57, %v2046_v0  ;;  %v1574_v36 = vadd.f32 %v1542_v12, %v1506_v54  ;;  %v4152_v49 = vmul.f32 %v2938_v16, %v3928_v1  ;;  %v1394_v26 = vrot.slane %v1288_v58, 2 }
  0xd2   : > { %v4967_v48 = vrot.slane %v4021_v21, 2  ;;  %v935_v32 = vadd.f32 %v840_v52, %v690_v53  ;;  %v1152_v27 = vsel %vm567_vm1, %v1150_v19, %v1151_v61  ;;  %v1600_v20 = vmul.f32 %v2954_v23, %v4148_v8 }
  0xd3   : > { %v2117_v12 = vmax.f32 %v2085_v38, 0.0  ;;  %v1818_v18 = vadd.f32 %v1745_v31, %v1574_v36  ;;  %v1395_v35 = vrot.slane %v4152_v49, 2  ;;  %v4168_v6 = vmul.f32 %v2954_v23, %v4158_v45  ;;  %v4312_v49 = vld [vmem:[%s2922_s12 + $0x178] sm:$0x3] }
  0xd4   : > { %v1989_v39 = vsel %vm812_vm2, %v4967_v48, %v1988_v2  ;;  %v1003_v21 = vadd.f32 %v971_v28, %v935_v32  ;;  %v1706_v50 = vrot.slane %v1600_v20, 1  ;;  %v1844_v2 = vmul.f32 %v3006_v51, %v4148_v8 }
  0xd5   : > { %v4174_v4 = vmul.f32 %v3006_v51, %v4158_v45  ;;  %2753 = vmatmul.mubr.msk.f32.gmra.mrb[8].mxu0 %vm2148_vm3, %v2117_v12  ;;  %v2062_v24 = vadd.f32 %v1989_v39, %v1818_v18  ;;  %v1396_v31 = vsel %vm812_vm2, %v1394_v26, %v1395_v35  ;;  %v1527_v3 = vmul.f32 %v2940_v17, %v4148_v8 }
  0xd6   : > { %v1707_v13 = vrot.slane %v4168_v6, 1  ;;  %v1247_v62 = vadd.f32 %v1152_v27, %v1003_v21  ;;  %v1950_v28 = vrot.slane %v1844_v2, 2  ;;  %v510_v33 = vmul.f32 %v2926_v10, %v3761_v47  ;;  %v4226_v21 = vld [vmem:[%s2922_s12 + $0x168] sm:$0xff] }
  0xd7   : > { %v1951_v7 = vrot.slane %v4174_v4, 2  ;;  %v2101_v25 = vadd.f32 %v3863_v57, %v2062_v24  ;;  %v461_v29 = vmul.f32 %v2924_v9, %v3761_v47  ;;  %v4191_v63 = vmul.f32 %v2926_v10, %v3767_v42 }
  0xd8   : > { %v755_v0 = vmul.f32 %v2928_v11, %v3761_v47  ;;  %v1491_v54 = vadd.f32 %v1396_v31, %v1247_v62  ;;  %v1708_v56 = vsel %vm567_vm1, %v1706_v50, %v1707_v13  ;;  %v633_v58 = vrot.slane %v510_v33, 1  ;;  %v4232_v31 = vld [vmem:[%s2922_s12 + $0x170] sm:$0xff] }
  0xd9   : > { %v4200_v53 = vmul.f32 %v2928_v11, %v3767_v42  ;;  %v2133_v52 = vmax.f32 %v2101_v25, 0.0  ;;  %v1952_v19 = vsel %vm812_vm2, %v1950_v28, %v1951_v7  ;;  %v634_v38 = vrot.slane %v4191_v63, 1 }
  0xda   : > { %v878_v47 = vrot.slane %v755_v0, 2  ;;  %v1559_v36 = vadd.f32 %v1527_v3, %v1491_v54  ;;  %v1068_v48 = vmul.f32 %v2936_v15, %v3996_v22  ;;  %v4211_v39 = vmul.f32 %v2936_v15, %v4002_v44 }
  0xdb   : > { %v879_v26 = vrot.slane %v4200_v53, 2  ;;  %2777 = vmatmul.mubr.msk.f32.gmra.mrb[8].mxu1 %vm2148_vm3, %v2133_v52  ;;  %v635_v32 = vsel %vm567_vm1, %v633_v58, %v634_v38  ;;  %v987_v27 = vmul.f32 %v2934_v14, %v3996_v22  ;;  %v1312_v20 = vmul.f32 %v2938_v16, %v3996_v22 }
  0xdc   : > { %v4223_v12 = vmul.f32 %v2938_v16, %v4002_v44  ;;  %v1803_v18 = vadd.f32 %v1708_v56, %v1559_v36  ;;  %v706_v50 = vadd.f32 %v635_v32, %v461_v29  ;;  %v1190_v24 = vrot.slane %v1068_v48, 1 }
  0xdd   : > { %v880_v2 = vsel %vm812_vm2, %v878_v47, %v879_v26  ;;  %v4951_v3 = vrot.slane %v4211_v39, 1  ;;  %v1434_v62 = vrot.slane %v1312_v20, 2  ;;  %v1624_v33 = vmul.f32 %v2954_v23, %v4226_v21 }
  0xde   : > { %v4950_v28 = vrot.slane %v4223_v12, 2  ;;  %v2047_v25 = vadd.f32 %v1952_v19, %v1803_v18  ;;  %v951_v0 = vadd.f32 %v880_v2, %v706_v50  ;;  %v4240_v29 = vmul.f32 %v2954_v23, %v4232_v31 }
  0xdf   : > { %v1868_v54 = vmul.f32 %v3006_v51, %v4226_v21  ;;  %v1192_v56 = vsel %vm567_vm1, %v1190_v24, %v4951_v3  ;;  %v1543_v58 = vmul.f32 %v2940_v17, %v4226_v21  ;;  %v1746_v52 = vrot.slane %v1624_v33, 1 }
  0xe0   : > { %v4251_v19 = vmul.f32 %v3006_v51, %v4232_v31  ;;  %v2086_v47 = vadd.f32 %v3863_v57, %v2047_v25  ;;  %v1019_v36 = vadd.f32 %v987_v27, %v951_v0  ;;  %v1747_v48 = vrot.slane %v4240_v29, 1  ;;  %v4269_v0 = vld [vmem:[%s2922_s12 + $0xb8] sm:$0x3] }
  0xe1   : > { %v1990_v32 = vrot.slane %v1868_v54, 2  ;;  %v1436_v20 = vsel %vm812_vm2, %v1434_v62, %v4950_v28  ;;  %v488_v50 = vmul.f32 %v2926_v10, %v3804_v37  ;;  %v733_v2 = vmul.f32 %v2928_v11, %v3804_v37 }
  0xe2   : > { %v4952_v18 = vrot.slane %v4251_v19, 2  ;;  %v2118_v24 = vmax.f32 %v2086_v47, 0.0  ;;  %v1263_v33 = vadd.f32 %v1192_v56, %v1019_v36  ;;  %v1748_v27 = vsel %vm567_vm1, %v1746_v52, %v1747_v48 }
  0xe3   : > { %v446_v25 = vmul.f32 %v2924_v9, %v3693_v41  ;;  %v596_v62 = vrot.slane %v488_v50, 1  ;;  %v841_v54 = vrot.slane %v733_v2, 2  ;;  %v972_v28 = vmul.f32 %v2934_v14, %v3928_v1 }
  0xe4   : > { %v1046_v3 = vmul.f32 %v2936_v15, %v4039_v5  ;;  %2755 = vmatprep.mubr.msk.f32.mxu0 %vm2148_vm3, %v2118_v24  ;;  %v1507_v37 = vadd.f32 %v1436_v20, %v1263_v33  ;;  %v1992_v56 = vsel %vm812_vm2, %v1990_v32, %v4952_v18  ;;  %v1290_v41 = vmul.f32 %v2938_v16, %v4039_v5 }
  0xe5   : > { %v1602_v52 = vmul.f32 %v2954_v23, %v4269_v0  ;;  %v597_v47 = vsel %vm567_vm1, %v594_v59, %v596_v62  ;;  %v842_v36 = vsel %vm812_vm2, %v839_v55, %v841_v54  ;;  %v1846_v20 = vmul.f32 %v3006_v51, %v4269_v0 }
  0xe6   : > { %v1153_v50 = vrot.slane %v1046_v3, 1  ;;  %v1575_v2 = vadd.f32 %v1543_v58, %v1507_v37  ;;  %v691_v32 = vadd.f32 %v597_v47, %v446_v25  ;;  %v1397_v24 = vrot.slane %v1290_v41, 2 }
  0xe7   : > { %v1709_v33 = vrot.slane %v1602_v52, 1  ;;  %v1528_v40 = vmul.f32 %v2940_v17, %v4158_v45  ;;  %v1953_v59 = vrot.slane %v1846_v20, 2  ;;  %v512_v60 = vmul.f32 %v2926_v10, %v3847_v43 }
  0xe8   : > { %v1154_v18 = vsel %vm567_vm1, %v1151_v61, %v1153_v50  ;;  %v1819_v55 = vadd.f32 %v1748_v27, %v1575_v2  ;;  %v936_v3 = vadd.f32 %v842_v36, %v691_v32  ;;  %v1398_v58 = vsel %vm812_vm2, %v1395_v35, %v1397_v24 }
  0xe9   : > { %v462_v25 = vmul.f32 %v2924_v9, %v3767_v42  ;;  %v1710_v34 = vsel %vm567_vm1, %v1707_v13, %v1709_v33  ;;  %v1954_v61 = vsel %vm812_vm2, %v1951_v7, %v1953_v59  ;;  %v636_v62 = vrot.slane %v512_v60, 1 }
  0xea   : > { %v757_v27 = vmul.f32 %v2928_v11, %v3847_v43  ;;  %v2063_v54 = vadd.f32 %v1992_v56, %v1819_v55  ;;  %v1004_v37 = vadd.f32 %v972_v28, %v936_v3  ;;  %v1070_v35 = vmul.f32 %v2936_v15, %v4082_v30 }
  0xeb   : > { %v1314_v42 = vmul.f32 %v2938_v16, %v4082_v30  ;;  %v637_v6 = vsel %vm567_vm1, %v634_v38, %v636_v62  ;;  %v988_v13 = vmul.f32 %v2934_v14, %v4002_v44  ;;  %v1626_v43 = vmul.f32 %v2954_v23, %v4312_v49 }
  0xec   : > { %v881_v4 = vrot.slane %v757_v27, 2  ;;  %v2102_v7 = vadd.f32 %v3863_v57, %v2063_v54  ;;  %v1248_v28 = vadd.f32 %v1154_v18, %v1004_v37  ;;  %v707_v56 = vadd.f32 %v637_v6, %v462_v25 }
  0xed   : > { %v1193_v41 = vrot.slane %v1070_v35, 1  ;;  %v1437_v47 = vrot.slane %v1314_v42, 2  ;;  %v1749_v63 = vrot.slane %v1626_v43, 1  ;;  %v1870_v38 = vmul.f32 %v3006_v51, %v4312_v49 }
  0xee   : > { %v882_v52 = vsel %vm812_vm2, %v879_v26, %v881_v4  ;;  %v2134_v36 = vmax.f32 %v2102_v7, 0.0  ;;  %v1492_v50 = vadd.f32 %v1398_v58, %v1248_v28  ;;  %v1544_v2 = vmul.f32 %v2940_v17, %v4232_v31 }
  0xef   : > { %v952_v20 = vadd.f32 %v882_v52, %v707_v56  ;;  %v4968_v32 = vrot.slane %v4211_v39, 1  ;;  %v4969_v24 = vrot.slane %v4223_v12, 2  ;;  %v1750_v26 = vsel %vm567_vm1, %v1747_v48, %v1749_v63 }
  0xf0   : > { %v1993_v33 = vrot.slane %v1870_v38, 2  ;;  %2779 = vmatprep.mubr.msk.f32.mxu1 %vm2148_vm3, %v2134_v36  ;;  %v1560_v59 = vadd.f32 %v1528_v40, %v1492_v50  ;;  %v489_v55 = vmul.f32 %v2926_v10, %v3918_v46  ;;  %v4347_v39 = vmul.f32 %v2926_v10, %v3928_v1  ;;  %v4388_v36 = vld [vmem:[%s2922_s12 + $0xc0] sm:$0xff] }
  0xf1   : > { %v1194_v18 = vsel %vm567_vm1, %v4968_v32, %v1193_v41  ;;  %v1438_v53 = vsel %vm812_vm2, %v4969_v24, %v1437_v47  ;;  %v1020_v60 = vadd.f32 %v988_v13, %v952_v20  ;;  %v447_v12 = vmul.f32 %v2924_v9, %v3918_v46 }
  0xf2   : > { %v734_v29 = vmul.f32 %v2928_v11, %v3918_v46  ;;  %v4355_v48 = vmul.f32 %v2928_v11, %v3928_v1  ;;  %v973_v40 = vmul.f32 %v2934_v14, %v4148_v8  ;;  %v1804_v3 = vadd.f32 %v1710_v34, %v1560_v59 }
  0xf3   : > { %v1264_v58 = vadd.f32 %v1194_v18, %v1020_v60  ;;  %v598_v25 = vrot.slane %v489_v55, 1  ;;  %v599_v62 = vrot.slane %v4347_v39, 1  ;;  %v1047_v37 = vmul.f32 %v2936_v15, %v4148_v8  ;;  %v4394_v18 = vld [vmem:[%s2922_s12 + $0xc8] sm:$0xff] }
  0xf4   : > { %v843_v27 = vrot.slane %v734_v29, 2  ;;  %v844_v54 = vrot.slane %v4355_v48, 2  ;;  %v4365_v46 = vmul.f32 %v2936_v15, %v4158_v45  ;;  %v2048_v35 = vadd.f32 %v1954_v61, %v1804_v3 }
  0xf5   : > { %v1508_v42 = vadd.f32 %v1438_v53, %v1264_v58  ;;  %v600_v34 = vsel %vm567_vm1, %v598_v25, %v599_v62  ;;  %v1291_v6 = vmul.f32 %v2938_v16, %v4148_v8  ;;  %v1155_v43 = vrot.slane %v1047_v37, 1 }
  0xf6   : > { %v692_v4 = vadd.f32 %v600_v34, %v447_v12  ;;  %v845_v13 = vsel %vm812_vm2, %v843_v27, %v844_v54  ;;  %v1156_v7 = vrot.slane %v4365_v46, 1  ;;  %v2087_v28 = vadd.f32 %v3863_v57, %v2048_v35 }
  0xf7   : > { %v1576_v61 = vadd.f32 %v1544_v2, %v1508_v42  ;;  %v4379_v56 = vmul.f32 %v2938_v16, %v4158_v45  ;;  %v1399_v41 = vrot.slane %v1291_v6, 2  ;;  %v4970_v52 = vrot.slane %v4251_v19, 2 }
  0xf8   : > { %v937_v63 = vadd.f32 %v845_v13, %v692_v4  ;;  %v1157_v38 = vsel %vm567_vm1, %v1155_v43, %v1156_v7  ;;  %v1603_v50 = vmul.f32 %v4388_v36, %v2954_v23  ;;  %v2119_v20 = vmax.f32 %v2087_v28, 0.0 }
  0xf9   : > { %v1994_v47 = vsel %vm812_vm2, %v4970_v52, %v1993_v33  ;;  %v1820_v2 = vadd.f32 %v1750_v26, %v1576_v61  ;;  %v1400_v32 = vrot.slane %v4379_v56, 2  ;;  %v4398_v19 = vmul.f32 %v4394_v18, %v2954_v23  ;;  %v4549_v56 = vld [vmem:[%s4440_s20 + $0x10] sm:$0x3] }
  0xfa   : > { %v1005_v24 = vadd.f32 %v973_v40, %v937_v63  ;;  %v1711_v53 = vrot.slane %v1603_v50, 1  ;;  %v1847_v33 = vmul.f32 %v4388_v36, %v3006_v51  ;;  %v4404_v59 = vmul.f32 %v4394_v18, %v3006_v51  ;;  %2756 = vmatmul.mubr.msk.f32.gmra.mrb[10].mxu0 %vm2148_vm3, %v2119_v20 }
  0xfb   : > { %v2064_v26 = vadd.f32 %v1994_v47, %v1820_v2  ;;  %v1401_v60 = vsel %vm812_vm2, %v1399_v41, %v1400_v32  ;;  %v1529_v55 = vmul.f32 %v4388_v36, %v2940_v17  ;;  %v1712_v12 = vrot.slane %v4398_v19, 1 }
  0xfc   : > { %v1249_v29 = vadd.f32 %v1157_v38, %v1005_v24  ;;  %v1955_v40 = vrot.slane %v1847_v33, 2  ;;  %v1956_v3 = vrot.slane %v4404_v59, 2  ;;  %v513_v58 = vmul.f32 %v2926_v10, %v3996_v22  ;;  %v4463_v24 = vld [vmem:[%s4440_s20] sm:$0xff] }
  0xfd   : > { %v2103_v25 = vadd.f32 %v3863_v57, %v2064_v26  ;;  %v463_v27 = vmul.f32 %v2924_v9, %v3996_v22  ;;  %v4423_v37 = vmul.f32 %v2926_v10, %v4002_v44  ;;  %v758_v35 = vmul.f32 %v2928_v11, %v3996_v22 }
  0xfe   : > { %v1493_v42 = vadd.f32 %v1401_v60, %v1249_v29  ;;  %v1713_v34 = vsel %vm567_vm1, %v1711_v53, %v1712_v12  ;;  %v638_v6 = vrot.slane %v513_v58, 1  ;;  %v4432_v4 = vmul.f32 %v2928_v11, %v4002_v44  ;;  %v4469_v60 = vld [vmem:[%s4440_s20 + $0x8] sm:$0xff] }
  0xff   : > { %v2135_v13 = vmax.f32 %v2103_v25, 0.0  ;;  %v1957_v43 = vsel %vm812_vm2, %v1955_v40, %v1956_v3  ;;  %v639_v22 = vrot.slane %v4423_v37, 1  ;;  %v883_v28 = vrot.slane %v758_v35, 2 }
 0x100   : > { %v1561_v61 = vadd.f32 %v1529_v55, %v1493_v42  ;;  %v884_v41 = vrot.slane %v4432_v4, 2  ;;  %v1071_v52 = vmul.f32 %v2936_v15, %v4226_v21  ;;  %v4448_v47 = vmul.f32 %v2936_v15, %v4232_v31 }
 0x101   : > { %2780 = vmatmul.mubr.msk.f32.gmra.mrb[10].mxu1 %vm2148_vm3, %v2135_v13  ;;  %v640_v63 = vsel %vm567_vm1, %v638_v6, %v639_v22  ;;  %v989_v38 = vmul.f32 %v2934_v14, %v4226_v21  ;;  %v1315_v50 = vmul.f32 %v2938_v16, %v4226_v21  ;;  %v4460_v20 = vmul.f32 %v2938_v16, %v4232_v31 }
 0x102   : > { %v1805_v2 = vadd.f32 %v1713_v34, %v1561_v61  ;;  %v708_v53 = vadd.f32 %v640_v63, %v463_v27  ;;  %v885_v33 = vsel %vm812_vm2, %v883_v28, %v884_v41  ;;  %v1195_v26 = vrot.slane %v1071_v52, 1 }
 0x103   : > { %v1196_v55 = vrot.slane %v4448_v47, 1  ;;  %v1439_v29 = vrot.slane %v1315_v50, 2  ;;  %v4953_v40 = vrot.slane %v4460_v20, 2  ;;  %v1627_v58 = vmul.f32 %v2954_v23, %v4463_v24 }
 0x104   : > { %v2049_v25 = vadd.f32 %v1957_v43, %v1805_v2  ;;  %v953_v35 = vadd.f32 %v885_v33, %v708_v53  ;;  %v4477_v27 = vmul.f32 %v2954_v23, %v4469_v60  ;;  %v1871_v42 = vmul.f32 %v3006_v51, %v4463_v24 }
 0x105   : > { %v1197_v34 = vsel %vm567_vm1, %v1195_v26, %v1196_v55  ;;  %v1545_v6 = vmul.f32 %v2940_v17, %v4463_v24  ;;  %v1751_v13 = vrot.slane %v1627_v58, 1  ;;  %v4488_v28 = vmul.f32 %v3006_v51, %v4469_v60 }
 0x106   : > { %v2088_v43 = vadd.f32 %v3863_v57, %v2049_v25  ;;  %v1021_v61 = vadd.f32 %v989_v38, %v953_v35  ;;  %v4955_v52 = vrot.slane %v4477_v27, 1  ;;  %v1995_v63 = vrot.slane %v1871_v42, 2 }
 0x107   : > { %v1441_v50 = vsel %vm812_vm2, %v1439_v29, %v4953_v40  ;;  %v4954_v2 = vrot.slane %v4488_v28, 2  ;;  %v491_v53 = vmul.f32 %v2926_v10, %v4039_v5  ;;  %v736_v33 = vmul.f32 %v2928_v11, %v4039_v5 }
 0x108   : > { %v2120_v26 = vmax.f32 %v2088_v43, 0.0  ;;  %v1265_v58 = vadd.f32 %v1197_v34, %v1021_v61  ;;  %v1753_v38 = vsel %vm567_vm1, %v1751_v13, %v4955_v52  ;;  %v448_v25 = vmul.f32 %v2924_v9, %v3928_v1  ;;  %v4516_v43 = vld [vmem:[%s2922_s12 + $0xd0] sm:$0x3] }
 0x109   : > { %v601_v35 = vrot.slane %v491_v53, 1  ;;  %v846_v29 = vrot.slane %v736_v33, 2  ;;  %v974_v42 = vmul.f32 %v2934_v14, %v4158_v45  ;;  %v1049_v40 = vmul.f32 %v2936_v15, %v4269_v0 }
 0x10a   : > { %2758 = vmatprep.mubr.msk.f32.mxu0 %vm2148_vm3, %v2120_v26  ;;  %v1509_v5 = vadd.f32 %v1441_v50, %v1265_v58  ;;  %v1997_v34 = vsel %vm812_vm2, %v1995_v63, %v4954_v2  ;;  %v1293_v13 = vmul.f32 %v2938_v16, %v4269_v0  ;;  %v1605_v1 = vmul.f32 %v4516_v43, %v2954_v23 }
 0x10b   : > { %v602_v61 = vsel %vm567_vm1, %v599_v62, %v601_v35  ;;  %v847_v50 = vsel %vm812_vm2, %v844_v54, %v846_v29  ;;  %v1158_v53 = vrot.slane %v1049_v40, 1  ;;  %v1849_v63 = vmul.f32 %v4516_v43, %v3006_v51 }
 0x10c   : > { %v1577_v33 = vadd.f32 %v1545_v6, %v1509_v5  ;;  %v693_v26 = vadd.f32 %v602_v61, %v448_v25  ;;  %v1402_v58 = vrot.slane %v1293_v13, 2  ;;  %v1714_v2 = vrot.slane %v1605_v1, 1 }
 0x10d   : > { %v1159_v52 = vsel %vm567_vm1, %v1156_v7, %v1158_v53  ;;  %v1530_v39 = vmul.f32 %v4394_v18, %v2940_v17  ;;  %v1958_v62 = vrot.slane %v1849_v63, 2  ;;  %v515_v48 = vmul.f32 %v2926_v10, %v4082_v30 }
 0x10e   : > { %v1821_v54 = vadd.f32 %v1753_v38, %v1577_v33  ;;  %v938_v40 = vadd.f32 %v847_v50, %v693_v26  ;;  %v1403_v6 = vsel %vm812_vm2, %v1400_v32, %v1402_v58  ;;  %v464_v25 = vmul.f32 %v2924_v9, %v4002_v44 }
 0x10f   : > { %v1715_v46 = vsel %vm567_vm1, %v1712_v12, %v1714_v2  ;;  %v1959_v7 = vsel %vm812_vm2, %v1956_v3, %v1958_v62  ;;  %v641_v35 = vrot.slane %v515_v48, 1  ;;  %v760_v38 = vmul.f32 %v2928_v11, %v4082_v30 }
 0x110   : > { %v2065_v29 = vadd.f32 %v1997_v34, %v1821_v54  ;;  %v1006_v5 = vadd.f32 %v974_v42, %v938_v40  ;;  %v1073_v32 = vmul.f32 %v2936_v15, %v4312_v49  ;;  %v1317_v44 = vmul.f32 %v2938_v16, %v4312_v49 }
 0x111   : > { %v642_v19 = vsel %vm567_vm1, %v639_v22, %v641_v35  ;;  %v886_v59 = vrot.slane %v760_v38, 2  ;;  %v990_v12 = vmul.f32 %v2934_v14, %v4232_v31  ;;  %v1629_v30 = vmul.f32 %v2954_v23, %v4549_v56  ;;  %v4579_v58 = vpop.f32.mrb[0].mxu0 }
 0x112   : > { %v2104_v3 = vadd.f32 %v3863_v57, %v2065_v29  ;;  %v1250_v2 = vadd.f32 %v1159_v52, %v1006_v5  ;;  %v709_v42 = vadd.f32 %v642_v19, %v464_v25  ;;  %v1198_v34 = vrot.slane %v1073_v32, 1 }
 0x113   : > { %v887_v13 = vsel %vm812_vm2, %v884_v41, %v886_v59  ;;  %v1442_v1 = vrot.slane %v1317_v44, 2  ;;  %v1754_v37 = vrot.slane %v1629_v30, 1  ;;  %v1873_v22 = vmul.f32 %v3006_v51, %v4549_v56 }
 0x114   : > { %v2136_v61 = vmax.f32 %v2104_v3, 0.0  ;;  %v1494_v50 = vadd.f32 %v1403_v6, %v1250_v2  ;;  %v954_v53 = vadd.f32 %v887_v13, %v709_v42  ;;  %v1546_v63 = vmul.f32 %v2940_v17, %v4469_v60 }
 0x115   : > { %v1199_v57 = vsel %vm567_vm1, %v1196_v55, %v1198_v34  ;;  %v4971_v52 = vrot.slane %v4460_v20, 2  ;;  %v4972_v41 = vrot.slane %v4477_v27, 1  ;;  %v1998_v26 = vrot.slane %v1873_v22, 2  ;;  %v4588_v20 = vpop.f32.mrb[1].mxu0 }
 0x116   : > { %2782 = vmatprep.mubr.msk.f32.mxu1 %vm2148_vm3, %v2136_v61  ;;  %v1562_v62 = vadd.f32 %v1530_v39, %v1494_v50  ;;  %v1022_v48 = vadd.f32 %v990_v12, %v954_v53  ;;  %v492_v47 = vmul.f32 %v2926_v10, %v4148_v8  ;;  %v4586_v55 = vmul.f32 %v2926_v10, %v4158_v45 }
 0x117   : > { %v1443_v4 = vsel %vm812_vm2, %v4971_v52, %v1442_v1  ;;  %v1755_v33 = vsel %vm567_vm1, %v4972_v41, %v1754_v37  ;;  %v449_v27 = vmul.f32 %v2924_v9, %v4148_v8  ;;  %v737_v54 = vmul.f32 %v2928_v11, %v4148_v8 }
 0x118   : > { %v4596_v40 = vmul.f32 %v2928_v11, %v4158_v45  ;;  %v975_v39 = vmul.f32 %v4388_v36, %v2934_v14  ;;  %v1806_v6 = vadd.f32 %v1715_v46, %v1562_v62  ;;  %v1266_v25 = vadd.f32 %v1199_v57, %v1022_v48  ;;  %v4617_v42 = vpop.f32.mrb[0].mxu1  ;;  %v2822_v57 = vld [vmem:[%s2922_s12 + $0xd8] sm:$0xff]  ;;  %v4641_v62 = vld [vmem:[%s2922_s12 + $0xe0] sm:$0xff] }
 0x119   : > { %v603_v35 = vrot.slane %v492_v47, 1  ;;  %v604_v38 = vrot.slane %v4586_v55, 1  ;;  %v848_v29 = vrot.slane %v737_v54, 2  ;;  %v1050_v32 = vmul.f32 %v4388_v36, %v2936_v15  ;;  %v4629_v37 = vpop.f32.mrb[1].mxu1 }
 0x11a   : > { %v849_v5 = vrot.slane %v4596_v40, 2  ;;  %v4606_v8 = vmul.f32 %v4394_v18, %v2936_v15  ;;  %v2050_v44 = vadd.f32 %v1959_v7, %v1806_v6  ;;  %v1510_v19 = vadd.f32 %v1443_v4, %v1266_v25  ;;  %v4622_v7 = vld [vmem:[%s4935_s3] ss:$0 sm:$0xff] }
 0x11b   : > { %v605_v46 = vsel %vm567_vm1, %v603_v35, %v604_v38  ;;  %v1294_v59 = vmul.f32 %v4388_v36, %v2938_v16  ;;  %v1160_v3 = vrot.slane %v1050_v32, 1  ;;  %v4627_v36 = vmul.f32 %v4394_v18, %v2938_v16 }
 0x11c   : > { %v694_v12 = vadd.f32 %v605_v46, %v449_v27  ;;  %v850_v30 = vsel %vm812_vm2, %v848_v29, %v849_v5  ;;  %v1161_v2 = vrot.slane %v4606_v8, 1  ;;  %v2089_v34 = vadd.f32 %v4622_v7, %v2050_v44 }
 0x11d   : > { %v1578_v13 = vadd.f32 %v1546_v63, %v1510_v19  ;;  %v1404_v1 = vrot.slane %v1294_v59, 2  ;;  %v4973_v22 = vrot.slane %v4488_v28, 2  ;;  %v1606_v52 = vmul.f32 %v2822_v57, %v2954_v23 }
 0x11e   : > { %v939_v50 = vadd.f32 %v850_v30, %v694_v12  ;;  %v1162_v53 = vsel %vm567_vm1, %v1160_v3, %v1161_v2  ;;  %v2121_v63 = vmax.f32 %v2089_v34, 0.0  ;;  %v1405_v41 = vrot.slane %v4627_v36, 2 }
 0x11f   : > { %v1999_v61 = vsel %vm812_vm2, %v4973_v22, %v1998_v26  ;;  %v1822_v4 = vadd.f32 %v1755_v33, %v1578_v13  ;;  %v4645_v48 = vmul.f32 %v4641_v62, %v2954_v23  ;;  %v1716_v26 = vrot.slane %v1606_v52, 1 }
 0x120   : > { %v1007_v28 = vadd.f32 %v975_v39, %v939_v50  ;;  %v1850_v47 = vmul.f32 %v2822_v57, %v3006_v51  ;;  %v4650_v27 = vmul.f32 %v4641_v62, %v3006_v51  ;;  %2759 = vmatmul.mubr.msk.f32.gmra.mrb[12].mxu0 %vm2148_vm3, %v2121_v63  ;;  %v1406_v33 = vsel %vm812_vm2, %v1404_v1, %v1405_v41  ;;  %v4691_v63 = vld [vmem:[%s4440_s20 + $0x20] sm:$0xff] }
 0x121   : > { %v2066_v54 = vadd.f32 %v1999_v61, %v1822_v4  ;;  %v1531_v6 = vmul.f32 %v2822_v57, %v2940_v17  ;;  %v1717_v25 = vrot.slane %v4645_v48, 1  ;;  %v516_v32 = vmul.f32 %v2926_v10, %v4226_v21 }
 0x122   : > { %v1251_v35 = vadd.f32 %v1162_v53, %v1007_v28  ;;  %v1960_v39 = vrot.slane %v1850_v47, 2  ;;  %v1961_v29 = vrot.slane %v4650_v27, 2  ;;  %v465_v19 = vmul.f32 %v2924_v9, %v4226_v21 }
 0x123   : > { %v2105_v44 = vadd.f32 %v4622_v7, %v2066_v54  ;;  %v4666_v46 = vmul.f32 %v2926_v10, %v4232_v31  ;;  %v761_v59 = vmul.f32 %v2928_v11, %v4226_v21  ;;  %v1718_v30 = vsel %vm567_vm1, %v1716_v26, %v1717_v25  ;;  %v425_v21 = vld [vmem:[%s4440_s20 + $0x18] sm:$0xff] }
 0x124   : > { %v1495_v12 = vadd.f32 %v1406_v33, %v1251_v35  ;;  %v643_v3 = vrot.slane %v516_v32, 1  ;;  %v4675_v34 = vmul.f32 %v2928_v11, %v4232_v31  ;;  %v1962_v1 = vsel %vm812_vm2, %v1960_v39, %v1961_v29 }
 0x125   : > { %v2137_v13 = vmax.f32 %v2105_v44, 0.0  ;;  %v644_v22 = vrot.slane %v4666_v46, 1  ;;  %v888_v61 = vrot.slane %v761_v59, 2  ;;  %v1074_v57 = vmul.f32 %v2936_v15, %v4463_v24 }
 0x126   : > { %v1563_v50 = vadd.f32 %v1531_v6, %v1495_v12  ;;  %v889_v53 = vrot.slane %v4675_v34, 2  ;;  %v4687_v52 = vmul.f32 %v2936_v15, %v4469_v60  ;;  %v991_v28 = vmul.f32 %v2934_v14, %v4463_v24 }
 0x127   : > { %2783 = vmatmul.mubr.msk.f32.gmra.mrb[12].mxu1 %vm2148_vm3, %v2137_v13  ;;  %v645_v4 = vsel %vm567_vm1, %v643_v3, %v644_v22  ;;  %v1318_v26 = vmul.f32 %v2938_v16, %v4463_v24  ;;  %v4702_v47 = vmul.f32 %v2938_v16, %v4469_v60  ;;  %v1200_v35 = vrot.slane %v1074_v57, 1 }
 0x128   : > { %v1807_v54 = vadd.f32 %v1718_v30, %v1563_v50  ;;  %v710_v33 = vadd.f32 %v645_v4, %v465_v19  ;;  %v890_v6 = vsel %vm812_vm2, %v888_v61, %v889_v53  ;;  %v4956_v39 = vrot.slane %v4687_v52, 1 }
 0x129   : > { %v1444_v32 = vrot.slane %v1318_v26, 2  ;;  %v1445_v44 = vrot.slane %v4702_v47, 2  ;;  %v1630_v59 = vmul.f32 %v2954_v23, %v425_v21  ;;  %v4712_v3 = vmul.f32 %v2954_v23, %v4691_v63 }
 0x12a   : > { %v2051_v12 = vadd.f32 %v1962_v1, %v1807_v54  ;;  %v955_v24 = vadd.f32 %v890_v6, %v710_v33  ;;  %v1874_v19 = vmul.f32 %v3006_v51, %v425_v21  ;;  %v1202_v30 = vsel %vm567_vm1, %v1200_v35, %v4956_v39 }
 0x12b   : > { %v4720_v13 = vmul.f32 %v3006_v51, %v4691_v63  ;;  %v1756_v57 = vrot.slane %v1630_v59, 1  ;;  %v1757_v1 = vrot.slane %v4712_v3, 1  ;;  %v1446_v4 = vsel %vm812_vm2, %v1444_v32, %v1445_v44 }
 0x12c   : > { %v2090_v61 = vadd.f32 %v4622_v7, %v2051_v12  ;;  %v1023_v50 = vadd.f32 %v991_v28, %v955_v24  ;;  %v1547_v26 = vmul.f32 %v2940_v17, %v425_v21  ;;  %v494_v54 = vmul.f32 %v2926_v10, %v4269_v0 }
 0x12d   : > { %v739_v33 = vmul.f32 %v2928_v11, %v4269_v0  ;;  %v2000_v12 = vrot.slane %v1874_v19, 2  ;;  %v450_v28 = vmul.f32 %v2924_v9, %v4158_v45  ;;  %v2001_v59 = vrot.slane %v4720_v13, 2 }
 0x12e   : > { %v2122_v6 = vmax.f32 %v2090_v61, 0.0  ;;  %v1267_v35 = vadd.f32 %v1202_v30, %v1023_v50  ;;  %v606_v24 = vrot.slane %v494_v54, 1  ;;  %v1052_v32 = vmul.f32 %v4516_v43, %v2936_v15  ;;  %v2824_v30 = vld [vmem:[%s2922_s12 + $0xe8] sm:$0x3] }
 0x12f   : > { %v851_v39 = vrot.slane %v739_v33, 2  ;;  %v1758_v0 = vsel %vm567_vm1, %v1756_v57, %v1757_v1  ;;  %v1296_v19 = vmul.f32 %v4516_v43, %v2938_v16  ;;  %v1608_v45 = vmul.f32 %v2824_v30, %v2954_v23 }
 0x130   : > { %2761 = vmatprep.mubr.msk.f32.mxu0 %vm2148_vm3, %v2122_v6  ;;  %v1511_v21 = vadd.f32 %v1446_v4, %v1267_v35  ;;  %v607_v61 = vsel %vm567_vm1, %v604_v38, %v606_v24  ;;  %v1163_v4 = vrot.slane %v1052_v32, 1  ;;  %v1852_v54 = vmul.f32 %v2824_v30, %v3006_v51 }
 0x131   : > { %v852_v50 = vsel %vm812_vm2, %v849_v5, %v851_v39  ;;  %v695_v57 = vadd.f32 %v607_v61, %v450_v28  ;;  %v976_v43 = vmul.f32 %v4394_v18, %v2934_v14  ;;  %v1407_v6 = vrot.slane %v1296_v19, 2  ;;  %v427_v28 = vld [vmem:[%s4440_s20 + $0x28] sm:$0x3] }
 0x132   : > { %v1579_v33 = vadd.f32 %v1547_v26, %v1511_v21  ;;  %v2002_v55 = vsel %vm812_vm2, %v2000_v12, %v2001_v59  ;;  %v1532_v38 = vmul.f32 %v4641_v62, %v2940_v17  ;;  %v1719_v35 = vrot.slane %v1608_v45, 1 }
 0x133   : > { %v518_v40 = vmul.f32 %v2926_v10, %v4312_v49  ;;  %v940_v39 = vadd.f32 %v852_v50, %v695_v57  ;;  %v1164_v26 = vsel %vm567_vm1, %v1161_v2, %v1163_v4  ;;  %v466_v18 = vmul.f32 %v2924_v9, %v4232_v31 }
 0x134   : > { %v1823_v5 = vadd.f32 %v1758_v0, %v1579_v33  ;;  %v1408_v12 = vsel %vm812_vm2, %v1405_v41, %v1407_v6  ;;  %v1963_v24 = vrot.slane %v1852_v54, 2  ;;  %v763_v32 = vmul.f32 %v2928_v11, %v4312_v49 }
 0x135   : > { %v646_v62 = vrot.slane %v518_v40, 1  ;;  %v1008_v21 = vadd.f32 %v976_v43, %v940_v39  ;;  %v1076_v8 = vmul.f32 %v2936_v15, %v4549_v56  ;;  %v1320_v2 = vmul.f32 %v2938_v16, %v4549_v56  ;;  %v4786_v15 = vld [vmem:[%s4937_s5] ss:$0 sm:$0xff] }
 0x136   : > { %v2067_v10 = vadd.f32 %v2002_v55, %v1823_v5  ;;  %v891_v31 = vrot.slane %v763_v32, 2  ;;  %v992_v36 = vmul.f32 %v2934_v14, %v4469_v60  ;;  %v1632_v41 = vmul.f32 %v2954_v23, %v427_v28 }
 0x137   : > { %v647_v9 = vsel %vm567_vm1, %v644_v22, %v646_v62  ;;  %v1252_v49 = vadd.f32 %v1164_v26, %v1008_v21  ;;  %v1203_v19 = vrot.slane %v1076_v8, 1  ;;  %v1720_v16 = vsel %vm567_vm1, %v1717_v25, %v1719_v35  ;;  %v2745_v34 = vpop.f32.mrb[2].mxu0 }
 0x138   : > { %v2106_v11 = vadd.f32 %v4622_v7, %v2067_v10  ;;  %v711_v0 = vadd.f32 %v647_v9, %v466_v18  ;;  %v1964_v14 = vsel %vm812_vm2, %v1961_v29, %v1963_v24  ;;  %v892_v23 = vsel %vm812_vm2, %v889_v53, %v891_v31 }
 0x139   : > { %v1447_v60 = vrot.slane %v1320_v2, 2  ;;  %v1496_v46 = vadd.f32 %v1408_v12, %v1252_v49  ;;  %v1548_v30 = vmul.f32 %v2940_v17, %v4691_v63  ;;  %v4974_v48 = vrot.slane %v4687_v52, 1  ;;  %v2325_v52 = vpop.f32.mrb[3].mxu0 }
 0x13a   : > { %v2138_v56 = vmax.f32 %v2106_v11, 0.0  ;;  %v956_v22 = vadd.f32 %v892_v23, %v711_v0  ;;  %v1759_v45 = vrot.slane %v1632_v41, 1  ;;  %v1876_v27 = vmul.f32 %v3006_v51, %v427_v28 }
 0x13b   : > { %v1204_v25 = vsel %vm567_vm1, %v4974_v48, %v1203_v19  ;;  %v2321_v29 = vadd.f32 %v4579_v58, %v4786_v15  ;;  %v1564_v53 = vadd.f32 %v1532_v38, %v1496_v46  ;;  %v2401_v17 = vadd.f32 %v4617_v42, %v4786_v15 }
 0x13c   : > { %2785 = vmatprep.mubr.msk.f32.mxu1 %vm2148_vm3, %v2138_v56  ;;  %v1024_v61 = vadd.f32 %v992_v36, %v956_v22  ;;  %v1448_v51 = vsel %vm812_vm2, %v1445_v44, %v1447_v60  ;;  %v2316_v63 = vadd.f32 %v4786_v15, %v4588_v20  ;;  %v2396_v50 = vadd.f32 %v4786_v15, %v4629_v37 }
 0x13d   : > { %v2475_v58 = vmax.f32 %v2321_v29, 0.0  ;;  %v1808_v4 = vadd.f32 %v1720_v16, %v1564_v53  ;;  %v2491_v33 = vmax.f32 %v2401_v17, 0.0  ;;  %v2331_v42 = vadd.f32 %v2745_v34, %v4786_v15  ;;  %v2769_v38 = vpop.f32.mrb[2].mxu1 }
 0x13e   : > { %v1268_v54 = vadd.f32 %v1204_v25, %v1024_v61  ;;  %v2003_v57 = vrot.slane %v1876_v27, 2  ;;  %v2474_v47 = vmax.f32 %v2316_v63, 0.0  ;;  %v2490_v44 = vmax.f32 %v2396_v50, 0.0  ;;  %v2405_v26 = vpop.f32.mrb[3].mxu1 }
 0x13f   : > { %2508 = vst.msk [vmem:[%s4810_s7 + $0x8] sm:$0xff] %vm2506_vm4, %v2475_v58  ;;  %v2326_v43 = vadd.f32 %v4786_v15, %v2325_v52  ;;  %v2052_v20 = vadd.f32 %v1964_v14, %v1808_v4  ;;  %2524 = vst.msk [vmem:[%s4810_s7 + $0x88] sm:$0xff] %vm2506_vm4, %v2491_v33  ;;  %v2477_v37 = vmax.f32 %v2331_v42, 0.0  ;;  %v1760_v55 = vsel %vm567_vm1, %v1757_v1, %v1759_v45 }
 0x140   : > { %v1512_v6 = vadd.f32 %v1448_v51, %v1268_v54  ;;  %2507 = vst.msk [vmem:[%s4810_s7] sm:$0xff] %vm2506_vm4, %v2474_v47  ;;  %2523 = vst.msk [vmem:[%s4810_s7 + $0x80] sm:$0xff] %vm2506_vm4, %v2490_v44  ;;  %v2411_v39 = vadd.f32 %v2769_v38, %v4786_v15  ;;  %v2004_v3 = vsel %vm812_vm2, %v2001_v59, %v2003_v57 }
 0x141   : > { %v2476_v35 = vmax.f32 %v2326_v43, 0.0  ;;  %v2091_v40 = vadd.f32 %v4622_v7, %v2052_v20  ;;  %2510 = vst.msk [vmem:[%s4810_s7 + $0x18] sm:$0xff] %vm2506_vm4, %v2477_v37  ;;  %v2406_v1 = vadd.f32 %v4786_v15, %v2405_v26 }
 0x142   : > { %v1580_v5 = vadd.f32 %v1548_v30, %v1512_v6  ;;  %v2493_v12 = vmax.f32 %v2411_v39, 0.0 }
 0x143   : > { %2509 = vst.msk [vmem:[%s4810_s7 + $0x10] sm:$0xff] %vm2506_vm4, %v2476_v35  ;;  %v2123_v28 = vmax.f32 %v2091_v40, 0.0  ;;  %v2492_v24 = vmax.f32 %v2406_v1, 0.0 }
 0x144   : > { %v1824_v18 = vadd.f32 %v1760_v55, %v1580_v5  ;;  %2526 = vst.msk [vmem:[%s4810_s7 + $0x98] sm:$0xff] %vm2506_vm4, %v2493_v12 }
 0x145   : > { %2762 = vmatmul.mubr.msk.f32.gmra.mrb[14].mxu0 %vm2148_vm3, %v2123_v28  ;;  %2525 = vst.msk [vmem:[%s4810_s7 + $0x90] sm:$0xff] %vm2506_vm4, %v2492_v24 }
 0x146   : > { %v2068_v62 = vadd.f32 %v2004_v3, %v1824_v18 }
 0x148   : > { %v2107_v13 = vadd.f32 %v4622_v7, %v2068_v62 }
 0x14a   : > { %v2139_v59 = vmax.f32 %v2107_v13, 0.0 }
 0x14c   : > { %2786 = vmatmul.mubr.msk.f32.gmra.mrb[14].mxu1 %vm2148_vm3, %v2139_v59 }
 0x15c   : > { %v2748_v32 = vpop.f32.mrb[4].mxu0 }
 0x15d   : > { %v2341_v10 = vadd.f32 %v2748_v32, %v4786_v15  ;;  %v2335_v21 = vpop.f32.mrb[5].mxu0 }
 0x15e   : > { %v2336_v8 = vadd.f32 %v4786_v15, %v2335_v21 }
 0x15f   : > { %v2479_v2 = vmax.f32 %v2341_v10, 0.0 }
 0x160   : > { %v2478_v9 = vmax.f32 %v2336_v8, 0.0 }
 0x161   : > { %2512 = vst.msk [vmem:[%s4810_s7 + $0x28] sm:$0xff] %vm2506_vm4, %v2479_v2 }
 0x162   : > { %2511 = vst.msk [vmem:[%s4810_s7 + $0x20] sm:$0xff] %vm2506_vm4, %v2478_v9 }
 0x163   : > { %v2772_v31 = vpop.f32.mrb[4].mxu1 }
 0x164   : > { %v2421_v7 = vadd.f32 %v2772_v31, %v4786_v15  ;;  %v2415_v36 = vpop.f32.mrb[5].mxu1 }
 0x165   : > { %v2416_v41 = vadd.f32 %v4786_v15, %v2415_v36 }
 0x166   : > { %v2495_v11 = vmax.f32 %v2421_v7, 0.0 }
 0x167   : > { %v2494_v49 = vmax.f32 %v2416_v41, 0.0 }
 0x168   : > { %2528 = vst.msk [vmem:[%s4810_s7 + $0xa8] sm:$0xff] %vm2506_vm4, %v2495_v11 }
 0x169   : > { %2527 = vst.msk [vmem:[%s4810_s7 + $0xa0] sm:$0xff] %vm2506_vm4, %v2494_v49 }
 0x182   : > { %v2751_v0 = vpop.f32.mrb[6].mxu0 }
 0x183   : > { %v2351_v19 = vadd.f32 %v2751_v0, %v4786_v15  ;;  %v2345_v16 = vpop.f32.mrb[7].mxu0 }
 0x184   : > { %v2346_v14 = vadd.f32 %v4786_v15, %v2345_v16 }
 0x185   : > { %v2481_v23 = vmax.f32 %v2351_v19, 0.0 }
 0x186   : > { %v2480_v60 = vmax.f32 %v2346_v14, 0.0 }
 0x187   : > { %2514 = vst.msk [vmem:[%s4810_s7 + $0x38] sm:$0xff] %vm2506_vm4, %v2481_v23 }
 0x188   : > { %v2775_v56 = vpop.f32.mrb[6].mxu1  ;;  %2513 = vst.msk [vmem:[%s4810_s7 + $0x30] sm:$0xff] %vm2506_vm4, %v2480_v60 }
 0x189   : > { %v2431_v46 = vadd.f32 %v2775_v56, %v4786_v15  ;;  %v2425_v22 = vpop.f32.mrb[7].mxu1 }
 0x18a   : > { %v2426_v30 = vadd.f32 %v4786_v15, %v2425_v22 }
 0x18b   : > { %v2497_v48 = vmax.f32 %v2431_v46, 0.0 }
 0x18c   : > { %v2496_v25 = vmax.f32 %v2426_v30, 0.0 }
 0x18d   : > { %2530 = vst.msk [vmem:[%s4810_s7 + $0xb8] sm:$0xff] %vm2506_vm4, %v2497_v48 }
 0x18e   : > { %2529 = vst.msk [vmem:[%s4810_s7 + $0xb0] sm:$0xff] %vm2506_vm4, %v2496_v25 }
 0x1a8   : > { %v2754_v45 = vpop.f32.mrb[8].mxu0 }
 0x1a9   : > { %v2361_v27 = vadd.f32 %v2754_v45, %v4786_v15  ;;  %v2355_v29 = vpop.f32.mrb[9].mxu0 }
 0x1aa   : > { %v2356_v34 = vadd.f32 %v4786_v15, %v2355_v29 }
 0x1ab   : > { %v2483_v53 = vmax.f32 %v2361_v27, 0.0 }
 0x1ac   : > { %v2482_v61 = vmax.f32 %v2356_v34, 0.0 }
 0x1ad   : > { %2516 = vst.msk [vmem:[%s4810_s7 + $0x48] sm:$0xff] %vm2506_vm4, %v2483_v53 }
 0x1ae   : > { %v2778_v17 = vpop.f32.mrb[8].mxu1  ;;  %2515 = vst.msk [vmem:[%s4810_s7 + $0x40] sm:$0xff] %vm2506_vm4, %v2482_v61 }
 0x1af   : > { %v2441_v52 = vadd.f32 %v2778_v17, %v4786_v15  ;;  %v2435_v51 = vpop.f32.mrb[9].mxu1 }
 0x1b0   : > { %v2436_v58 = vadd.f32 %v4786_v15, %v2435_v51 }
 0x1b1   : > { %v2499_v63 = vmax.f32 %v2441_v52, 0.0 }
 0x1b2   : > { %v2498_v50 = vmax.f32 %v2436_v58, 0.0 }
 0x1b3   : > { %2532 = vst.msk [vmem:[%s4810_s7 + $0xc8] sm:$0xff] %vm2506_vm4, %v2499_v63 }
 0x1b4   : > { %2531 = vst.msk [vmem:[%s4810_s7 + $0xc0] sm:$0xff] %vm2506_vm4, %v2498_v50 }
 0x1cd   : > { %v2757_v4 = vpop.f32.mrb[10].mxu0 }
 0x1ce   : > { %v2371_v54 = vadd.f32 %v2757_v4, %v4786_v15  ;;  %v2365_v33 = vpop.f32.mrb[11].mxu0 }
 0x1cf   : > { %v2366_v42 = vadd.f32 %v4786_v15, %v2365_v33 }
 0x1d0   : > { %v2485_v57 = vmax.f32 %v2371_v54, 0.0 }
 0x1d1   : > { %v2484_v47 = vmax.f32 %v2366_v42, 0.0 }
 0x1d2   : > { %2518 = vst.msk [vmem:[%s4810_s7 + $0x58] sm:$0xff] %vm2506_vm4, %v2485_v57 }
 0x1d3   : > { %2517 = vst.msk [vmem:[%s4810_s7 + $0x50] sm:$0xff] %vm2506_vm4, %v2484_v47 }
 0x1d4   : > { %v2781_v44 = vpop.f32.mrb[10].mxu1 }
 0x1d5   : > { %v2451_v43 = vadd.f32 %v2781_v44, %v4786_v15  ;;  %v2445_v20 = vpop.f32.mrb[11].mxu1 }
 0x1d6   : > { %v2446_v6 = vadd.f32 %v4786_v15, %v2445_v20 }
 0x1d7   : > { %v2501_v37 = vmax.f32 %v2451_v43, 0.0 }
 0x1d8   : > { %v2500_v55 = vmax.f32 %v2446_v6, 0.0 }
 0x1d9   : > { %2534 = vst.msk [vmem:[%s4810_s7 + $0xd8] sm:$0xff] %vm2506_vm4, %v2501_v37 }
 0x1da   : > { %2533 = vst.msk [vmem:[%s4810_s7 + $0xd0] sm:$0xff] %vm2506_vm4, %v2500_v55 }
 0x1f3   : > { %v2760_v38 = vpop.f32.mrb[12].mxu0 }
 0x1f4   : > { %v2381_v35 = vadd.f32 %v2760_v38, %v4786_v15  ;;  %v2375_v40 = vpop.f32.mrb[13].mxu0 }
 0x1f5   : > { %v2376_v5 = vadd.f32 %v4786_v15, %v2375_v40 }
 0x1f6   : > { %v2487_v39 = vmax.f32 %v2381_v35, 0.0 }
 0x1f7   : > { %v2486_v26 = vmax.f32 %v2376_v5, 0.0 }
 0x1f8   : > { %2520 = vst.msk [vmem:[%s4810_s7 + $0x68] sm:$0xff] %vm2506_vm4, %v2487_v39 }
 0x1f9   : > { %2519 = vst.msk [vmem:[%s4810_s7 + $0x60] sm:$0xff] %vm2506_vm4, %v2486_v26 }
 0x1fa   : > { %v2784_v3 = vpop.f32.mrb[12].mxu1 }
 0x1fb   : > { %v2461_v1 = vadd.f32 %v2784_v3, %v4786_v15  ;;  %v2455_v28 = vpop.f32.mrb[13].mxu1 }
 0x1fc   : > { %v2456_v18 = vadd.f32 %v4786_v15, %v2455_v28 }
 0x1fd   : > { %v2503_v12 = vmax.f32 %v2461_v1, 0.0 }
 0x1fe   : > { %v2502_v24 = vmax.f32 %v2456_v18, 0.0 }
 0x1ff   : > { %2536 = vst.msk [vmem:[%s4810_s7 + $0xe8] sm:$0xff] %vm2506_vm4, %v2503_v12 }
 0x200   : > { %2535 = vst.msk [vmem:[%s4810_s7 + $0xe0] sm:$0xff] %vm2506_vm4, %v2502_v24 }
 0x218   : > { %v2763_v62 = vpop.f32.mrb[14].mxu0 }
 0x219   : > { %v2391_v13 = vadd.f32 %v2763_v62, %v4786_v15  ;;  %v2385_v59 = vpop.f32.mrb[15].mxu0 }
 0x21a   : > { %v2386_v32 = vadd.f32 %v4786_v15, %v2385_v59 }
 0x21b   : > { %v2489_v10 = vmax.f32 %v2391_v13, 0.0 }
 0x21c   : > { %v2488_v21 = vmax.f32 %v2386_v32, 0.0 }
 0x21d   : > { %2522 = vst.msk [vmem:[%s4810_s7 + $0x78] sm:$0xff] %vm2506_vm4, %v2489_v10 }
 0x21e   : > { %2521 = vst.msk [vmem:[%s4810_s7 + $0x70] sm:$0xff] %vm2506_vm4, %v2488_v21 }
 0x21f   : > { %v2787_v8 = vpop.f32.mrb[14].mxu1 }
 0x220   : > { %v2471_v2 = vadd.f32 %v2787_v8, %v4786_v15  ;;  %v2465_v9 = vpop.f32.mrb[15].mxu1 }
 0x221   : > { %v2466_v31 = vadd.f32 %v4786_v15, %v2465_v9 }
 0x222   : > { %v2505_v7 = vmax.f32 %v2471_v2, 0.0 }
 0x223   : > { %v2504_v36 = vmax.f32 %v2466_v31, 0.0 }
 0x224   : > { %2538 = vst.msk [vmem:[%s4810_s7 + $0xf8] sm:$0xff] %vm2506_vm4, %v2505_v7 }
 0x225   : > { %2537 = vst.msk [vmem:[%s4810_s7 + $0xf0] sm:$0xff] %vm2506_vm4, %v2504_v36 }
 0x226 PF: > { %s16_s23 = sadd.s32 1, %s2847_s23   ;;  %s4975_s21 = smov %s2843_s22 }
 0x227   : > { %p13_p5 = scmp.ge.s32.totalorder %s16_s23, 4   ;;  %s4976_s22 = smov %s4978_s24 }
 0x229   :  { %15 = sbr.rel (!%p13_p5) target bundleno = 2 (0x2), region = 77 }

</bundles_post_ra>
